<compile_context>
chip_gen: v6e
topology: v6e:2x2x1
jax: 0.10.0
libtpu: 0.0.40
codegen_flags: <defaults>
</compile_context>

<pallas_src>
import functools
import math

import jax
import jax.numpy as jnp
from jax import lax
from jax.experimental import pallas as pl
from jax.experimental.pallas import tpu as pltpu

EPS = 1e-7

# Set to jnp.bfloat16 to feed the MXU with bf16 operands (f32 accumulation) on
# v6e/v7x.  Kept f32 by default for exact numerical parity with the PyTorch module.
MXU_DTYPE = jnp.float32


def _silu(x):
    return x * jax.nn.sigmoid(x)


def global_update_kernel(
    xh_ref, x_ref, xT_ref, v_ref, adj_ref,
    wqkv_ref, bqkv_ref,
    wv1_ref, bv1_ref, wv2r_ref,
    wfa_ref, wfb_ref, bf_ref,
    wx2r_ref, wh2_ref, bh2_ref,
    sb_ref,
    gdx_ref, gh_ref,
    resv_ref, resx_ref,
    *, T, N, dim, H,
):
    hd = dim // H
    d = math.sqrt(hd) + EPS          # d1 == d2 in the reference module
    inv_d = 1.0 / d

    xh3 = xh_ref[...]                # [T, N, dim]
    xh2 = xh3.reshape(T * N, dim)

    # ------------- fused Q1/K1/V1/Q2/K2/V2 projection (one wide matmul) -------
    qkv = jnp.dot(xh2.astype(MXU_DTYPE), wqkv_ref[...],
                  preferred_element_type=jnp.float32) + bqkv_ref[...]   # [T*N, 6*dim]

    def blk(i):
        return qkv[:, i * dim:(i + 1) * dim].reshape(T, N, dim).astype(MXU_DTYPE)

    q1, k1, v1, q2, k2, v2 = (blk(i) for i in range(6))

    # ------- per-component directional tensor dir_a[t,n,m] = adj*(x[m,a]-x[n,a])
    adj = adj_ref[...]               # [N, N]
    x3 = x_ref[...]                  # [T, N, 3]
    xT3 = xT_ref[...]                # [T, 3, N]
    dir_parts = []
    for a in range(3):
        col = x3[:, :, a:a + 1]      # [T, N, 1]
        row = xT3[:, a:a + 1, :]     # [T, 1, N]
        dir_parts.append(adj[None] * (row - col))        # [T, N, N]

    # ------------- per-head attention; heads occupy disjoint column blocks -----
    if hd % 128 == 0:
        # Lane-aligned static slices: contraction depth / output width = hd.
        for h in range(H):
            sl = slice(h * hd, (h + 1) * hd)
            q1h, k1h, v1h = q1[:, :, sl], k1[:, :, sl], v1[:, :, sl]
            q2h, k2h, v2h = q2[:, :, sl], k2[:, :, sl], v2[:, :, sl]
            w1h = jnp.tanh(jnp.einsum('tnd,tmd->tnm', q1h, k1h,
                                      preferred_element_type=jnp.float32) * inv_d)
            for a in range(3):
                lhs = (w1h * dir_parts[a]).astype(MXU_DTYPE)
                resv_ref[:, a, :, sl] = jnp.einsum(
                    'tnm,tmd->tnd', lhs, v1h, preferred_element_type=jnp.float32)
            w2h = jnp.tanh(jnp.einsum('tnd,tmd->tnm', q2h, k2h,
                                      preferred_element_type=jnp.float32) * inv_d) * d
            resx_ref[:, :, sl] = jnp.einsum(
                'tnm,tmd->tnd', w2h.astype(MXU_DTYPE), v2h,
                preferred_element_type=jnp.float32)
    else:
        # hd < 128: masks, but only over the dim-wide half (not 2*dim); iota hoisted.
        lane = lax.broadcasted_iota(jnp.int32, (1, 1, dim), 2)
        for h in range(H):
            m = ((lane >= h * hd) & (lane < (h + 1) * hd)).astype(MXU_DTYPE)

            # attention 1, head h
            w1h = jnp.tanh(jnp.einsum('tnd,tmd->tnm', q1 * m, k1,
                                      preferred_element_type=jnp.float32) * inv_d)
            v1h = v1 * m
            for a in range(3):
                lhs = (w1h * dir_parts[a]).astype(MXU_DTYPE)
                contrib = jnp.einsum('tnm,tmd->tnd', lhs, v1h,
                                     preferred_element_type=jnp.float32)
                if h == 0:
                    resv_ref[:, a] = contrib
                else:
                    resv_ref[:, a] += contrib

            # attention 2, head h
            w2h = jnp.tanh(jnp.einsum('tnd,tmd->tnm', q2 * m, k2,
                                      preferred_element_type=jnp.float32) * inv_d) * d
            contrib2 = jnp.einsum('tnm,tmd->tnd', w2h.astype(MXU_DTYPE), v2 * m,
                                  preferred_element_type=jnp.float32)
            if h == 0:
                resx_ref[...] = contrib2
            else:
                resx_ref[...] += contrib2

    # ------------- net_v: Linear+SiLU, then Linear(dim,1) as VPU mul+reduce ----
    resv2 = resv_ref[...].reshape(T * 3 * N, dim)
    h1 = _silu(jnp.dot(resv2.astype(MXU_DTYPE), wv1_ref[...],
                       preferred_element_type=jnp.float32) + bv1_ref[...])      # [T*3N, dim]
    outv = jnp.sum(h1 * wv2r_ref[...], axis=-1, keepdims=True) + sb_ref[0]      # [T*3N, 1]
    outv4 = outv.reshape(T, 3, N, 1)
    gdv_n3 = jnp.concatenate([outv4[:, 0], outv4[:, 1], outv4[:, 2]], axis=-1)  # [T, N, 3]

    # ------------- fused net_2x / net_2h first layers on cat(xh, res_x) --------
    resx2 = resx_ref[...].reshape(T * N, dim)
    hcat = _silu(jnp.dot(xh2.astype(MXU_DTYPE), wfa_ref[...],
                         preferred_element_type=jnp.float32)
                 + jnp.dot(resx2.astype(MXU_DTYPE), wfb_ref[...],
                           preferred_element_type=jnp.float32)
                 + bf_ref[...])                                                  # [T*N, 2dim]
    hx = hcat[:, :dim]                                                           # net_2x hidden
    hh = hcat[:, dim:]                                                           # net_2h hidden
    gate = jnp.sum(hx * wx2r_ref[...], axis=-1, keepdims=True) + sb_ref[1]       # [T*N, 1]
    gh = jnp.dot(hh.astype(MXU_DTYPE), wh2_ref[...],
                 preferred_element_type=jnp.float32) + bh2_ref[...]              # [T*N, dim]

    gdx_ref[...] = (v_ref[...] + gdv_n3) * gate.reshape(T, N, 1)
    gh_ref[...] = gh.reshape(T, N, dim)


def _vmem_bytes_estimate(T, N, dim):
    d2, d6 = 2 * dim, 6 * dim
    tiled_in = T * N * dim + 2 * (T * N * 3) + T * 3 * N
    weights = (N * N + dim * d6 + d6 + dim * dim + 2 * dim + dim
               + 2 * dim * d2 + d2 + dim + dim * dim + dim)
    outs = T * N * 3 + T * N * dim
    scratch = T * 3 * N * dim + T * N * dim
    temps = (T * N * d6 + 6 * T * N * dim + 5 * T * N * N
             + T * 3 * N * dim + T * N * d2 + 8 * T * N)
    elems = 2 * (tiled_in + weights + outs) + scratch + temps
    return int(elems * 4 * 1.25)


def _choose_tile(CB, N, dim, rows_per_step):
    T = max(1, rows_per_step // max(N, 1))
    T = min(T, CB)
    if CB >= 2:
        # >= 2 grid steps: keeps both v7x TensorCores busy and lets BlockSpec
        # pipelining overlap DMA with compute.
        T = min(T, (CB + 1) // 2)
    budget = 40 * 1024 * 1024        # conservative for v7x's 64 MiB VMEM
    while T > 1 and _vmem_bytes_estimate(T, N, dim) > budget:
        T = (T + 1) // 2
    return max(1, T)


def global_update_forward(x, xh, e, eh, v, params, *, C, B, N, dim, H, E,
                          rows_per_step=512):
    """Pallas forward. Returns (g_delta_x [C, B*N, 3], g_h [C, B*N, dim]).

    `eh` is accepted (as in the PyTorch signature) but unused by the forward pass.
    """
    del eh  # unused in the reference forward
    (wqkv, bqkv, wv1, bv1, wv2, bv2,
     wx1, bx1, wx2, bx2, wh1, bh1, wh2, bh2) = params

    f32 = jnp.float32
    CB = C * B

    # Edge adjacency mask (glue): dir is rebuilt inside the kernel as
    # adj * (x[m] - x[n]) which matches the scatter in get_dir().
    idx0 = e[0][:E]
    idx1 = e[1][:E]
    adj = jnp.zeros((N, N), f32).at[idx0, idx1].set(1.0)

    xh_f = xh.reshape(CB, N, dim).astype(f32)
    x_f = x.reshape(CB, N, 3).astype(f32)
    v_f = v.reshape(CB, N, 3).astype(f32)
    xT_f = jnp.swapaxes(x_f, -1, -2)                     # [CB, 3, N]

    # ------------------ fuse / reorganize weights (trace-time) ----------------
    wqkv_f = jnp.concatenate([wqkv[i] for i in range(6)], axis=1).astype(MXU_DTYPE)  # [dim,6dim]
    bqkv_f = jnp.concatenate([bqkv[i] for i in range(6)], axis=1).astype(f32)        # [1,6dim]
    wv1_c = wv1.astype(MXU_DTYPE)                                                    # [dim,dim]
    wv2_row = wv2.reshape(1, dim).astype(f32)                                        # [1,dim]
    w_fa = jnp.concatenate([wx1[:dim], wh1[:dim]], axis=1).astype(MXU_DTYPE)         # [dim,2dim]
    w_fb = jnp.concatenate([wx1[dim:], wh1[dim:]], axis=1).astype(MXU_DTYPE)         # [dim,2dim]
    b_f = jnp.concatenate([bx1, bh1], axis=1).astype(f32)                            # [1,2dim]
    wx2_row = wx2.reshape(1, dim).astype(f32)                                        # [1,dim]
    wh2_c = wh2.astype(MXU_DTYPE)                                                    # [dim,dim]
    scalar_b = jnp.stack([bv2.reshape(()), bx2.reshape(())]).astype(f32)             # [2] -> SMEM

    # ------------------ tiling: pad CB to a multiple of the tile --------------
    T = _choose_tile(CB, N, dim, rows_per_step)
    steps = -(-CB // T)
    CB_pad = steps * T
    if CB_pad != CB:
        pad = CB_pad - CB
        z3 = jnp.zeros((pad, N, 3), f32)
        xh_f = jnp.concatenate([xh_f, jnp.zeros((pad, N, dim), f32)], axis=0)
        x_f = jnp.concatenate([x_f, z3], axis=0)
        v_f = jnp.concatenate([v_f, z3], axis=0)
        xT_f = jnp.concatenate([xT_f, jnp.zeros((pad, 3, N), f32)], axis=0)

    grid = (steps,)
    lead = lambda i: (i, 0, 0)
    c2 = lambda i: (0, 0)
    in_specs = [
        pl.BlockSpec((T, N, dim), lead),            # xh
        pl.BlockSpec((T, N, 3), lead),              # x
        pl.BlockSpec((T, 3, N), lead),              # x^T
        pl.BlockSpec((T, N, 3), lead),              # v
        pl.BlockSpec((N, N), c2),                   # adj
        pl.BlockSpec((dim, 6 * dim), c2),           # fused QKV weight [Q1 K1 V1 Q2 K2 V2]
        pl.BlockSpec((1, 6 * dim), c2),             # fused QKV bias
        pl.BlockSpec((dim, dim), c2),               # net_v W1 (unpadded)
        pl.BlockSpec((1, dim), c2),                 # net_v b1
        pl.BlockSpec((1, dim), c2),                 # net_v W2 as a row
        pl.BlockSpec((dim, 2 * dim), c2),           # fused net_2x/2h W1 (xh rows)
        pl.BlockSpec((dim, 2 * dim), c2),           # fused net_2x/2h W1 (res_x rows, unpadded)
        pl.BlockSpec((1, 2 * dim), c2),             # fused net_2x/2h b1
        pl.BlockSpec((1, dim), c2),                 # net_2x W2 row (unpadded)
        pl.BlockSpec((dim, dim), c2),               # net_2h W2 (unpadded)
        pl.BlockSpec((1, dim), c2),                 # net_2h b2
        pl.BlockSpec(memory_space=pltpu.MemorySpace.SMEM),   # [bv2, bx2] scalars
    ]
    out_specs = (
        pl.BlockSpec((T, N, 3), lead),
        pl.BlockSpec((T, N, dim), lead),
    )
    out_shape = (
        jax.ShapeDtypeStruct((CB_pad, N, 3), f32),
        jax.ShapeDtypeStruct((CB_pad, N, dim), f32),
    )
    scratch_shapes = [
        pltpu.VMEM((T, 3, N, dim), jnp.float32),    # res_v accumulator
        pltpu.VMEM((T, N, dim), jnp.float32),       # res_x accumulator
    ]

    # Advisory cost estimate so XLA schedules surrounding ops around the call.
    flops = int(
        2 * CB * N * dim * 6 * dim
        + 2 * 2 * H * CB * N * N * dim          # score matmuls (two attentions)
        + 2 * H * CB * 3 * N * N * dim          # attn-1 value matmuls
        + 2 * H * CB * N * N * dim              # attn-2 value matmuls
        + 2 * CB * 3 * N * dim * dim            # net_v layer 1
        + 2 * 2 * CB * N * dim * 2 * dim        # fused net_2x/2h layer 1
        + 2 * CB * N * dim * dim)               # net_2h layer 2
    transcendentals = int(CB * (2 * H * N * N + 3 * N * dim + N * 2 * dim))
    bytes_accessed = int(4 * (xh_f.size + x_f.size + xT_f.size + v_f.size + adj.size
                              + wqkv_f.size + bqkv_f.size + 4 * dim * dim
                              + 2 * dim * 2 * dim + 8 * dim
                              + CB_pad * N * (3 + dim)))
    cost = pl.CostEstimate(flops=flops, transcendentals=transcendentals,
                           bytes_accessed=bytes_accessed)

    vmem_limit = int(min(max(_vmem_bytes_estimate(T, N, dim), 32 * 1024 * 1024),
                         56 * 1024 * 1024))

    kernel = functools.partial(global_update_kernel, T=T, N=N, dim=dim, H=H)
    gdx, gh = pl.pallas_call(
        kernel,
        out_shape=out_shape,
        grid=grid,
        in_specs=in_specs,
        out_specs=out_specs,
        scratch_shapes=scratch_shapes,
        compiler_params=pltpu.CompilerParams(
            dimension_semantics=("parallel",),
            vmem_limit_bytes=vmem_limit),
        cost_estimate=cost,
    )(xh_f, x_f, xT_f, v_f, adj,
      wqkv_f, bqkv_f, wv1_c, bv1, wv2_row,
      w_fa, w_fb, b_f, wx2_row, wh2_c, bh2, scalar_b)

    g_delta_x = gdx[:CB].reshape(C, B * N, 3)
    g_h = gh[:CB].reshape(C, B * N, dim)
    return g_delta_x, g_h


# ------------------------- pure-JAX reference (for checking) ------------------
def reference_forward(x, xh, e, v, params, *, C, B, N, dim, H, E):
    (wqkv, bqkv, wv1, bv1, wv2, bv2,
     wx1, bx1, wx2, bx2, wh1, bh1, wh2, bh2) = params
    hd = dim // H
    d = math.sqrt(hd) + EPS

    def lin(i, t):
        return t @ wqkv[i] + bqkv[i, 0]

    q1 = lin(0, xh).reshape(C, B, N, H, hd)
    k1 = lin(1, xh).reshape(C, B, N, H, hd)
    v1 = lin(2, xh).reshape(C, B, N, H, hd)
    w1 = jnp.tanh(jnp.einsum('cbnhd,cbmhd->cbhnm', q1, k1) / d)

    idx0, idx1 = e[0][:E], e[1][:E]
    dir_mat = jnp.zeros((C, B, N, N, 3), jnp.float32)
    diff = x[:, :, idx1, :] - x[:, :, idx0, :]
    dir_mat = dir_mat.at[:, :, idx0, idx1, :].set(diff)

    res_v = jnp.einsum('cbhnm,cbnma,cbmhd->cbnahd', w1, dir_mat, v1)
    res_v = res_v.reshape(C, B, N, 3, dim)
    g_delta_v = (jax.nn.silu(res_v @ wv1 + bv1[0]) @ wv2 + bv2[0])[..., 0]

    q2 = lin(3, xh).reshape(C, B, N, H, hd)
    k2 = lin(4, xh).reshape(C, B, N, H, hd)
    v2 = lin(5, xh).reshape(C, B, N, H, hd)
    w2 = jnp.tanh(jnp.einsum('cbnhd,cbmhd->cbhnm', q2, k2) / d) * d
    res_x = jnp.einsum('cbhnm,cbmhd->cbnhd', w2, v2).reshape(C, B, N, dim)

    cat = jnp.concatenate([xh, res_x], axis=-1)
    gate = jax.nn.silu(cat @ wx1 + bx1[0]) @ wx2 + bx2[0]
    g_delta_x = (v + g_delta_v) * gate
    g_h = jax.nn.silu(cat @ wh1 + bh1[0]) @ wh2 + bh2[0]
    return g_delta_x.reshape(C, B * N, 3), g_h.reshape(C, B * N, dim)


def init_params(key, dim):
    ks = jax.random.split(key, 14)
    n = lambda k, shape, scale: (jax.random.normal(k, shape, jnp.float32) * scale)
    return (
        n(ks[0], (6, dim, dim), 1.0 / math.sqrt(dim)),      # wqkv (Q1,K1,V1,Q2,K2,V2)
        n(ks[1], (6, 1, dim), 0.1),                          # bqkv
        n(ks[2], (dim, dim), 1.0 / math.sqrt(dim)),          # net_v  W1
        n(ks[3], (1, dim), 0.1),                             # net_v  b1
        n(ks[4], (dim, 1), 1.0 / math.sqrt(dim)),            # net_v  W2
        n(ks[5], (1, 1), 0.1),                               # net_v  b2
        n(ks[6], (2 * dim, dim), 1.0 / math.sqrt(2 * dim)),  # net_2x W1
        n(ks[7], (1, dim), 0.1),                             # net_2x b1
        n(ks[8], (dim, 1), 1.0 / math.sqrt(dim)),            # net_2x W2
        n(ks[9], (1, 1), 0.1),                               # net_2x b2
        n(ks[10], (2 * dim, dim), 1.0 / math.sqrt(2 * dim)), # net_2h W1
        n(ks[11], (1, dim), 0.1),                            # net_2h b1
        n(ks[12], (dim, dim), 1.0 / math.sqrt(dim)),         # net_2h W2
        n(ks[13], (1, dim), 0.1),                            # net_2h b2
    )


if __name__ == "__main__":
    C, B, N, dim, H, E = 2, 2, 8, 32, 4, 12

    key = jax.random.PRNGKey(0)
    kx, kxh, kv, ke, kp = jax.random.split(key, 5)
    x = jax.random.normal(kx, (C, B, N, 3), jnp.float32)
    xh = jax.random.normal(kxh, (C, B, N, dim), jnp.float32)
    v = jax.random.normal(kv, (C, B, N, 3), jnp.float32)
    e = jax.random.randint(ke, (2, E), 0, N, jnp.int32)
    eh = None  # unused by the reference forward
    params = init_params(kp, dim)

    fwd = jax.jit(functools.partial(global_update_forward,
                                    C=C, B=B, N=N, dim=dim, H=H, E=E))
    g_delta_x, g_h = fwd(x, xh, e, eh, v, params)
    jax.block_until_ready((g_delta_x, g_h))

    ref_dx, ref_h = reference_forward(
        x, xh, e, v, params, C=C, B=B, N=N, dim=dim, H=H, E=E)

    assert g_delta_x.shape == (C, B * N, 3)
    assert g_h.shape == (C, B * N, dim)
    assert jnp.allclose(g_delta_x, ref_dx, atol=1e-3, rtol=1e-3)
    assert jnp.allclose(g_h, ref_h, atol=1e-3, rtol=1e-3)
    print("KERNEL_OK")
</pallas_src>

<mosaic_0001>
module attributes {stable_mosaic.version = 11 : i64} {
  func.func @global_update_kernel(%arg0: i32, %arg1: memref<2x8x32xf32, #tpu.memory_space<vmem>>, %arg2: memref<2x8x3xf32, #tpu.memory_space<vmem>>, %arg3: memref<2x3x8xf32, #tpu.memory_space<vmem>>, %arg4: memref<2x8x3xf32, #tpu.memory_space<vmem>>, %arg5: memref<8x8xf32, #tpu.memory_space<vmem>>, %arg6: memref<32x192xf32, #tpu.memory_space<vmem>>, %arg7: memref<1x192xf32, #tpu.memory_space<vmem>>, %arg8: memref<32x32xf32, #tpu.memory_space<vmem>>, %arg9: memref<1x32xf32, #tpu.memory_space<vmem>>, %arg10: memref<1x32xf32, #tpu.memory_space<vmem>>, %arg11: memref<32x64xf32, #tpu.memory_space<vmem>>, %arg12: memref<32x64xf32, #tpu.memory_space<vmem>>, %arg13: memref<1x64xf32, #tpu.memory_space<vmem>>, %arg14: memref<1x32xf32, #tpu.memory_space<vmem>>, %arg15: memref<32x32xf32, #tpu.memory_space<vmem>>, %arg16: memref<1x32xf32, #tpu.memory_space<vmem>>, %arg17: memref<2xf32, #tpu.memory_space<smem>>, %arg18: memref<2x8x3xf32, #tpu.memory_space<vmem>>, %arg19: memref<2x8x32xf32, #tpu.memory_space<vmem>>, %arg20: memref<2x3x8x32xf32, #tpu.memory_space<vmem>>, %arg21: memref<2x8x32xf32, #tpu.memory_space<vmem>>) attributes {dimension_semantics = [#tpu.dimension_semantics<parallel>], iteration_bounds = array<i64: 2>, scalar_prefetch = 0 : i64, scratch_operands = 2 : i64, tpu.core_type = #tpu.core_type<tc>, window_params = [{transform_indices = @transform_0, window_bounds = array<i64: 2, 8, 32>}, {transform_indices = @transform_1, window_bounds = array<i64: 2, 8, 3>}, {transform_indices = @transform_2, window_bounds = array<i64: 2, 3, 8>}, {transform_indices = @transform_3, window_bounds = array<i64: 2, 8, 3>}, {pipeline_mode = #tpu.pipeline_mode<synchronous>, transform_indices = @transform_4, window_bounds = array<i64: 8, 8>}, {pipeline_mode = #tpu.pipeline_mode<synchronous>, transform_indices = @transform_5, window_bounds = array<i64: 32, 192>}, {pipeline_mode = #tpu.pipeline_mode<synchronous>, transform_indices = @transform_6, window_bounds = array<i64: 1, 192>}, {pipeline_mode = #tpu.pipeline_mode<synchronous>, transform_indices = @transform_7, window_bounds = array<i64: 32, 32>}, {pipeline_mode = #tpu.pipeline_mode<synchronous>, transform_indices = @transform_8, window_bounds = array<i64: 1, 32>}, {pipeline_mode = #tpu.pipeline_mode<synchronous>, transform_indices = @transform_9, window_bounds = array<i64: 1, 32>}, {pipeline_mode = #tpu.pipeline_mode<synchronous>, transform_indices = @transform_10, window_bounds = array<i64: 32, 64>}, {pipeline_mode = #tpu.pipeline_mode<synchronous>, transform_indices = @transform_11, window_bounds = array<i64: 32, 64>}, {pipeline_mode = #tpu.pipeline_mode<synchronous>, transform_indices = @transform_12, window_bounds = array<i64: 1, 64>}, {pipeline_mode = #tpu.pipeline_mode<synchronous>, transform_indices = @transform_13, window_bounds = array<i64: 1, 32>}, {pipeline_mode = #tpu.pipeline_mode<synchronous>, transform_indices = @transform_14, window_bounds = array<i64: 32, 32>}, {pipeline_mode = #tpu.pipeline_mode<synchronous>, transform_indices = @transform_15, window_bounds = array<i64: 1, 32>}, {transform_indices = @transform_16, window_bounds = array<i64: 2>}, {transform_indices = @transform_17, window_bounds = array<i64: 2, 8, 3>}, {transform_indices = @transform_18, window_bounds = array<i64: 2, 8, 32>}]} {
    %c0 = arith.constant 0 : index
    %c0_0 = arith.constant 0 : index
    %c0_1 = arith.constant 0 : index
    %0 = vector.load %arg1[%c0, %c0_0, %c0_1] : memref<2x8x32xf32, #tpu.memory_space<vmem>>, vector<2x8x32xf32>
    %1 = vector.shape_cast %0 : vector<2x8x32xf32> to vector<16x32xf32>
    %c0_2 = arith.constant 0 : index
    %c0_3 = arith.constant 0 : index
    %2 = vector.load %arg6[%c0_2, %c0_3] : memref<32x192xf32, #tpu.memory_space<vmem>>, vector<32x192xf32>
    %cst = arith.constant dense<0.000000e+00> : vector<16x192xf32>
    %3 = tpu.matmul %1, %2, %cst {dimension_numbers = #tpu.dot_dimension_numbers<[1], [0], [0], [1], [0, 0, 1, 1], [], []>} : vector<16x32xf32>, vector<32x192xf32>, vector<16x192xf32> -> vector<16x192xf32>
    %c0_4 = arith.constant 0 : index
    %c0_5 = arith.constant 0 : index
    %4 = vector.load %arg7[%c0_4, %c0_5] : memref<1x192xf32, #tpu.memory_space<vmem>>, vector<1x192xf32>
    %5 = vector.broadcast %4 : vector<1x192xf32> to vector<16x192xf32>
    %6 = arith.addf %3, %5 : vector<16x192xf32>
    %7 = vector.extract_strided_slice %6 {offsets = [0, 0], sizes = [16, 32], strides = [1, 1]} : vector<16x192xf32> to vector<16x32xf32>
    %8 = vector.shape_cast %7 : vector<16x32xf32> to vector<2x8x32xf32>
    %9 = vector.extract_strided_slice %6 {offsets = [0, 32], sizes = [16, 32], strides = [1, 1]} : vector<16x192xf32> to vector<16x32xf32>
    %10 = vector.shape_cast %9 : vector<16x32xf32> to vector<2x8x32xf32>
    %11 = vector.extract_strided_slice %6 {offsets = [0, 64], sizes = [16, 32], strides = [1, 1]} : vector<16x192xf32> to vector<16x32xf32>
    %12 = vector.shape_cast %11 : vector<16x32xf32> to vector<2x8x32xf32>
    %13 = vector.extract_strided_slice %6 {offsets = [0, 96], sizes = [16, 32], strides = [1, 1]} : vector<16x192xf32> to vector<16x32xf32>
    %14 = vector.shape_cast %13 : vector<16x32xf32> to vector<2x8x32xf32>
    %15 = vector.extract_strided_slice %6 {offsets = [0, 128], sizes = [16, 32], strides = [1, 1]} : vector<16x192xf32> to vector<16x32xf32>
    %16 = vector.shape_cast %15 : vector<16x32xf32> to vector<2x8x32xf32>
    %17 = vector.extract_strided_slice %6 {offsets = [0, 160], sizes = [16, 32], strides = [1, 1]} : vector<16x192xf32> to vector<16x32xf32>
    %18 = vector.shape_cast %17 : vector<16x32xf32> to vector<2x8x32xf32>
    %c0_6 = arith.constant 0 : index
    %c0_7 = arith.constant 0 : index
    %19 = vector.load %arg5[%c0_6, %c0_7] : memref<8x8xf32, #tpu.memory_space<vmem>>, vector<8x8xf32>
    %c0_8 = arith.constant 0 : index
    %c0_9 = arith.constant 0 : index
    %c0_10 = arith.constant 0 : index
    %20 = vector.load %arg2[%c0_8, %c0_9, %c0_10] : memref<2x8x3xf32, #tpu.memory_space<vmem>>, vector<2x8x3xf32>
    %c0_11 = arith.constant 0 : index
    %c0_12 = arith.constant 0 : index
    %c0_13 = arith.constant 0 : index
    %21 = vector.load %arg3[%c0_11, %c0_12, %c0_13] : memref<2x3x8xf32, #tpu.memory_space<vmem>>, vector<2x3x8xf32>
    %22 = vector.extract_strided_slice %20 {offsets = [0, 0, 0], sizes = [2, 8, 1], strides = [1, 1, 1]} : vector<2x8x3xf32> to vector<2x8x1xf32>
    %23 = vector.extract_strided_slice %21 {offsets = [0, 0, 0], sizes = [2, 1, 8], strides = [1, 1, 1]} : vector<2x3x8xf32> to vector<2x1x8xf32>
    %24 = vector.shape_cast %19 : vector<8x8xf32> to vector<1x8x8xf32>
    %25 = vector.broadcast %23 : vector<2x1x8xf32> to vector<2x8x8xf32>
    %26 = vector.broadcast %22 : vector<2x8x1xf32> to vector<2x8x8xf32>
    %27 = arith.subf %25, %26 : vector<2x8x8xf32>
    %28 = vector.broadcast %24 : vector<1x8x8xf32> to vector<2x8x8xf32>
    %29 = arith.mulf %28, %27 : vector<2x8x8xf32>
    %30 = vector.extract_strided_slice %20 {offsets = [0, 0, 1], sizes = [2, 8, 1], strides = [1, 1, 1]} : vector<2x8x3xf32> to vector<2x8x1xf32>
    %31 = vector.extract_strided_slice %21 {offsets = [0, 1, 0], sizes = [2, 1, 8], strides = [1, 1, 1]} : vector<2x3x8xf32> to vector<2x1x8xf32>
    %32 = vector.shape_cast %19 : vector<8x8xf32> to vector<1x8x8xf32>
    %33 = vector.broadcast %31 : vector<2x1x8xf32> to vector<2x8x8xf32>
    %34 = vector.broadcast %30 : vector<2x8x1xf32> to vector<2x8x8xf32>
    %35 = arith.subf %33, %34 : vector<2x8x8xf32>
    %36 = vector.broadcast %32 : vector<1x8x8xf32> to vector<2x8x8xf32>
    %37 = arith.mulf %36, %35 : vector<2x8x8xf32>
    %38 = vector.extract_strided_slice %20 {offsets = [0, 0, 2], sizes = [2, 8, 1], strides = [1, 1, 1]} : vector<2x8x3xf32> to vector<2x8x1xf32>
    %39 = vector.extract_strided_slice %21 {offsets = [0, 2, 0], sizes = [2, 1, 8], strides = [1, 1, 1]} : vector<2x3x8xf32> to vector<2x1x8xf32>
    %40 = vector.shape_cast %19 : vector<8x8xf32> to vector<1x8x8xf32>
    %41 = vector.broadcast %39 : vector<2x1x8xf32> to vector<2x8x8xf32>
    %42 = vector.broadcast %38 : vector<2x8x1xf32> to vector<2x8x8xf32>
    %43 = arith.subf %41, %42 : vector<2x8x8xf32>
    %44 = vector.broadcast %40 : vector<1x8x8xf32> to vector<2x8x8xf32>
    %45 = arith.mulf %44, %43 : vector<2x8x8xf32>
    %46 = tpu.iota {dimensions = array<i32: 2>} : vector<1x1x32xi32>
    %c0_i32 = arith.constant 0 : i32
    %47 = vector.broadcast %c0_i32 : i32 to vector<1x1x32xi32>
    %48 = arith.cmpi sge, %46, %47 : vector<1x1x32xi32>
    %c8_i32 = arith.constant 8 : i32
    %49 = vector.broadcast %c8_i32 : i32 to vector<1x1x32xi32>
    %50 = arith.cmpi slt, %46, %49 : vector<1x1x32xi32>
    %51 = arith.andi %48, %50 : vector<1x1x32xi1>
    %52 = arith.extui %51 : vector<1x1x32xi1> to vector<1x1x32xi32>
    %53 = arith.sitofp %52 : vector<1x1x32xi32> to vector<1x1x32xf32>
    %54 = vector.broadcast %53 : vector<1x1x32xf32> to vector<2x8x32xf32>
    %55 = arith.mulf %8, %54 : vector<2x8x32xf32>
    "tpu.trace_start"() <{level = 10 : i32, message = "tnd,tmd->tnm"}> : () -> ()
    %cst_14 = arith.constant dense<0.000000e+00> : vector<2x8x8xf32>
    %56 = tpu.matmul %55, %10, %cst_14 {dimension_numbers = #tpu.dot_dimension_numbers<[2], [2], [1], [1], [0, 0, 0, 1, 1, 1], [0], [0]>} : vector<2x8x32xf32>, vector<2x8x32xf32>, vector<2x8x8xf32> -> vector<2x8x8xf32>
    "tpu.trace_stop"() : () -> ()
    %cst_15 = arith.constant 0.353553385 : f32
    %57 = vector.broadcast %cst_15 : f32 to vector<2x8x8xf32>
    %58 = arith.mulf %56, %57 : vector<2x8x8xf32>
    %59 = math.tanh %58 : vector<2x8x8xf32>
    %60 = vector.broadcast %53 : vector<1x1x32xf32> to vector<2x8x32xf32>
    %61 = arith.mulf %12, %60 : vector<2x8x32xf32>
    %62 = arith.mulf %59, %29 : vector<2x8x8xf32>
    "tpu.trace_start"() <{level = 10 : i32, message = "tnm,tmd->tnd"}> : () -> ()
    %cst_16 = arith.constant dense<0.000000e+00> : vector<2x8x32xf32>
    %63 = tpu.matmul %62, %61, %cst_16 {dimension_numbers = #tpu.dot_dimension_numbers<[2], [1], [1], [2], [0, 0, 0, 1, 1, 2], [0], [0]>} : vector<2x8x8xf32>, vector<2x8x32xf32>, vector<2x8x32xf32> -> vector<2x8x32xf32>
    "tpu.trace_stop"() : () -> ()
    %c0_17 = arith.constant 0 : index
    %c0_18 = arith.constant 0 : index
    %c0_19 = arith.constant 0 : index
    %c0_20 = arith.constant 0 : index
    %64 = vector.load %arg20[%c0_17, %c0_18, %c0_19, %c0_20] : memref<2x3x8x32xf32, #tpu.memory_space<vmem>>, vector<2x1x8x32xf32>
    %65 = vector.shape_cast %64 : vector<2x1x8x32xf32> to vector<2x8x32xf32>
    %66 = vector.shape_cast %63 : vector<2x8x32xf32> to vector<2x1x8x32xf32>
    tpu.vector_store %arg20[%c0_17, %c0_18, %c0_19, %c0_20], %66 {strides = array<i32>} : memref<2x3x8x32xf32, #tpu.memory_space<vmem>>, vector<2x1x8x32xf32>,
    %67 = arith.mulf %59, %37 : vector<2x8x8xf32>
    "tpu.trace_start"() <{level = 10 : i32, message = "tnm,tmd->tnd"}> : () -> ()
    %cst_21 = arith.constant dense<0.000000e+00> : vector<2x8x32xf32>
    %68 = tpu.matmul %67, %61, %cst_21 {dimension_numbers = #tpu.dot_dimension_numbers<[2], [1], [1], [2], [0, 0, 0, 1, 1, 2], [0], [0]>} : vector<2x8x8xf32>, vector<2x8x32xf32>, vector<2x8x32xf32> -> vector<2x8x32xf32>
    "tpu.trace_stop"() : () -> ()
    %c0_22 = arith.constant 0 : index
    %c1 = arith.constant 1 : index
    %c0_23 = arith.constant 0 : index
    %c0_24 = arith.constant 0 : index
    %69 = vector.load %arg20[%c0_22, %c1, %c0_23, %c0_24] : memref<2x3x8x32xf32, #tpu.memory_space<vmem>>, vector<2x1x8x32xf32>
    %70 = vector.shape_cast %69 : vector<2x1x8x32xf32> to vector<2x8x32xf32>
    %71 = vector.shape_cast %68 : vector<2x8x32xf32> to vector<2x1x8x32xf32>
    tpu.vector_store %arg20[%c0_22, %c1, %c0_23, %c0_24], %71 {strides = array<i32>} : memref<2x3x8x32xf32, #tpu.memory_space<vmem>>, vector<2x1x8x32xf32>,
    %72 = arith.mulf %59, %45 : vector<2x8x8xf32>
    "tpu.trace_start"() <{level = 10 : i32, message = "tnm,tmd->tnd"}> : () -> ()
    %cst_25 = arith.constant dense<0.000000e+00> : vector<2x8x32xf32>
    %73 = tpu.matmul %72, %61, %cst_25 {dimension_numbers = #tpu.dot_dimension_numbers<[2], [1], [1], [2], [0, 0, 0, 1, 1, 2], [0], [0]>} : vector<2x8x8xf32>, vector<2x8x32xf32>, vector<2x8x32xf32> -> vector<2x8x32xf32>
    "tpu.trace_stop"() : () -> ()
    %c0_26 = arith.constant 0 : index
    %c2 = arith.constant 2 : index
    %c0_27 = arith.constant 0 : index
    %c0_28 = arith.constant 0 : index
    %74 = vector.load %arg20[%c0_26, %c2, %c0_27, %c0_28] : memref<2x3x8x32xf32, #tpu.memory_space<vmem>>, vector<2x1x8x32xf32>
    %75 = vector.shape_cast %74 : vector<2x1x8x32xf32> to vector<2x8x32xf32>
    %76 = vector.shape_cast %73 : vector<2x8x32xf32> to vector<2x1x8x32xf32>
    tpu.vector_store %arg20[%c0_26, %c2, %c0_27, %c0_28], %76 {strides = array<i32>} : memref<2x3x8x32xf32, #tpu.memory_space<vmem>>, vector<2x1x8x32xf32>,
    %77 = vector.broadcast %53 : vector<1x1x32xf32> to vector<2x8x32xf32>
    %78 = arith.mulf %14, %77 : vector<2x8x32xf32>
    "tpu.trace_start"() <{level = 10 : i32, message = "tnd,tmd->tnm"}> : () -> ()
    %cst_29 = arith.constant dense<0.000000e+00> : vector<2x8x8xf32>
    %79 = tpu.matmul %78, %16, %cst_29 {dimension_numbers = #tpu.dot_dimension_numbers<[2], [2], [1], [1], [0, 0, 0, 1, 1, 1], [0], [0]>} : vector<2x8x32xf32>, vector<2x8x32xf32>, vector<2x8x8xf32> -> vector<2x8x8xf32>
    "tpu.trace_stop"() : () -> ()
    %cst_30 = arith.constant 0.353553385 : f32
    %80 = vector.broadcast %cst_30 : f32 to vector<2x8x8xf32>
    %81 = arith.mulf %79, %80 : vector<2x8x8xf32>
    %82 = math.tanh %81 : vector<2x8x8xf32>
    %cst_31 = arith.constant 2.82842731 : f32
    %83 = vector.broadcast %cst_31 : f32 to vector<2x8x8xf32>
    %84 = arith.mulf %82, %83 : vector<2x8x8xf32>
    %85 = vector.broadcast %53 : vector<1x1x32xf32> to vector<2x8x32xf32>
    %86 = arith.mulf %18, %85 : vector<2x8x32xf32>
    "tpu.trace_start"() <{level = 10 : i32, message = "tnm,tmd->tnd"}> : () -> ()
    %cst_32 = arith.constant dense<0.000000e+00> : vector<2x8x32xf32>
    %87 = tpu.matmul %84, %86, %cst_32 {dimension_numbers = #tpu.dot_dimension_numbers<[2], [1], [1], [2], [0, 0, 0, 1, 1, 2], [0], [0]>} : vector<2x8x8xf32>, vector<2x8x32xf32>, vector<2x8x32xf32> -> vector<2x8x32xf32>
    "tpu.trace_stop"() : () -> ()
    %c0_33 = arith.constant 0 : index
    %c0_34 = arith.constant 0 : index
    %c0_35 = arith.constant 0 : index
    %88 = vector.load %arg21[%c0_33, %c0_34, %c0_35] : memref<2x8x32xf32, #tpu.memory_space<vmem>>, vector<2x8x32xf32>
    tpu.vector_store %arg21[%c0_33, %c0_34, %c0_35], %87 {strides = array<i32>} : memref<2x8x32xf32, #tpu.memory_space<vmem>>, vector<2x8x32xf32>,
    %c8_i32_36 = arith.constant 8 : i32
    %89 = vector.broadcast %c8_i32_36 : i32 to vector<1x1x32xi32>
    %90 = arith.cmpi sge, %46, %89 : vector<1x1x32xi32>
    %c16_i32 = arith.constant 16 : i32
    %91 = vector.broadcast %c16_i32 : i32 to vector<1x1x32xi32>
    %92 = arith.cmpi slt, %46, %91 : vector<1x1x32xi32>
    %93 = arith.andi %90, %92 : vector<1x1x32xi1>
    %94 = arith.extui %93 : vector<1x1x32xi1> to vector<1x1x32xi32>
    %95 = arith.sitofp %94 : vector<1x1x32xi32> to vector<1x1x32xf32>
    %96 = vector.broadcast %95 : vector<1x1x32xf32> to vector<2x8x32xf32>
    %97 = arith.mulf %8, %96 : vector<2x8x32xf32>
    "tpu.trace_start"() <{level = 10 : i32, message = "tnd,tmd->tnm"}> : () -> ()
    %cst_37 = arith.constant dense<0.000000e+00> : vector<2x8x8xf32>
    %98 = tpu.matmul %97, %10, %cst_37 {dimension_numbers = #tpu.dot_dimension_numbers<[2], [2], [1], [1], [0, 0, 0, 1, 1, 1], [0], [0]>} : vector<2x8x32xf32>, vector<2x8x32xf32>, vector<2x8x8xf32> -> vector<2x8x8xf32>
    "tpu.trace_stop"() : () -> ()
    %cst_38 = arith.constant 0.353553385 : f32
    %99 = vector.broadcast %cst_38 : f32 to vector<2x8x8xf32>
    %100 = arith.mulf %98, %99 : vector<2x8x8xf32>
    %101 = math.tanh %100 : vector<2x8x8xf32>
    %102 = vector.broadcast %95 : vector<1x1x32xf32> to vector<2x8x32xf32>
    %103 = arith.mulf %12, %102 : vector<2x8x32xf32>
    %104 = arith.mulf %101, %29 : vector<2x8x8xf32>
    "tpu.trace_start"() <{level = 10 : i32, message = "tnm,tmd->tnd"}> : () -> ()
    %cst_39 = arith.constant dense<0.000000e+00> : vector<2x8x32xf32>
    %105 = tpu.matmul %104, %103, %cst_39 {dimension_numbers = #tpu.dot_dimension_numbers<[2], [1], [1], [2], [0, 0, 0, 1, 1, 2], [0], [0]>} : vector<2x8x8xf32>, vector<2x8x32xf32>, vector<2x8x32xf32> -> vector<2x8x32xf32>
    "tpu.trace_stop"() : () -> ()
    %c0_40 = arith.constant 0 : index
    %c0_41 = arith.constant 0 : index
    %c0_42 = arith.constant 0 : index
    %c0_43 = arith.constant 0 : index
    %106 = vector.load %arg20[%c0_40, %c0_41, %c0_42, %c0_43] : memref<2x3x8x32xf32, #tpu.memory_space<vmem>>, vector<2x1x8x32xf32>
    %107 = vector.shape_cast %106 : vector<2x1x8x32xf32> to vector<2x8x32xf32>
    %108 = arith.addf %107, %105 : vector<2x8x32xf32>
    %c0_44 = arith.constant 0 : index
    %c0_45 = arith.constant 0 : index
    %c0_46 = arith.constant 0 : index
    %c0_47 = arith.constant 0 : index
    %109 = vector.load %arg20[%c0_44, %c0_45, %c0_46, %c0_47] : memref<2x3x8x32xf32, #tpu.memory_space<vmem>>, vector<2x1x8x32xf32>
    %110 = vector.shape_cast %109 : vector<2x1x8x32xf32> to vector<2x8x32xf32>
    %111 = vector.shape_cast %108 : vector<2x8x32xf32> to vector<2x1x8x32xf32>
    tpu.vector_store %arg20[%c0_44, %c0_45, %c0_46, %c0_47], %111 {strides = array<i32>} : memref<2x3x8x32xf32, #tpu.memory_space<vmem>>, vector<2x1x8x32xf32>,
    %112 = arith.mulf %101, %37 : vector<2x8x8xf32>
    "tpu.trace_start"() <{level = 10 : i32, message = "tnm,tmd->tnd"}> : () -> ()
    %cst_48 = arith.constant dense<0.000000e+00> : vector<2x8x32xf32>
    %113 = tpu.matmul %112, %103, %cst_48 {dimension_numbers = #tpu.dot_dimension_numbers<[2], [1], [1], [2], [0, 0, 0, 1, 1, 2], [0], [0]>} : vector<2x8x8xf32>, vector<2x8x32xf32>, vector<2x8x32xf32> -> vector<2x8x32xf32>
    "tpu.trace_stop"() : () -> ()
    %c0_49 = arith.constant 0 : index
    %c1_50 = arith.constant 1 : index
    %c0_51 = arith.constant 0 : index
    %c0_52 = arith.constant 0 : index
    %114 = vector.load %arg20[%c0_49, %c1_50, %c0_51, %c0_52] : memref<2x3x8x32xf32, #tpu.memory_space<vmem>>, vector<2x1x8x32xf32>
    %115 = vector.shape_cast %114 : vector<2x1x8x32xf32> to vector<2x8x32xf32>
    %116 = arith.addf %115, %113 : vector<2x8x32xf32>
    %c0_53 = arith.constant 0 : index
    %c1_54 = arith.constant 1 : index
    %c0_55 = arith.constant 0 : index
    %c0_56 = arith.constant 0 : index
    %117 = vector.load %arg20[%c0_53, %c1_54, %c0_55, %c0_56] : memref<2x3x8x32xf32, #tpu.memory_space<vmem>>, vector<2x1x8x32xf32>
    %118 = vector.shape_cast %117 : vector<2x1x8x32xf32> to vector<2x8x32xf32>
    %119 = vector.shape_cast %116 : vector<2x8x32xf32> to vector<2x1x8x32xf32>
    tpu.vector_store %arg20[%c0_53, %c1_54, %c0_55, %c0_56], %119 {strides = array<i32>} : memref<2x3x8x32xf32, #tpu.memory_space<vmem>>, vector<2x1x8x32xf32>,
    %120 = arith.mulf %101, %45 : vector<2x8x8xf32>
    "tpu.trace_start"() <{level = 10 : i32, message = "tnm,tmd->tnd"}> : () -> ()
    %cst_57 = arith.constant dense<0.000000e+00> : vector<2x8x32xf32>
    %121 = tpu.matmul %120, %103, %cst_57 {dimension_numbers = #tpu.dot_dimension_numbers<[2], [1], [1], [2], [0, 0, 0, 1, 1, 2], [0], [0]>} : vector<2x8x8xf32>, vector<2x8x32xf32>, vector<2x8x32xf32> -> vector<2x8x32xf32>
    "tpu.trace_stop"() : () -> ()
    %c0_58 = arith.constant 0 : index
    %c2_59 = arith.constant 2 : index
    %c0_60 = arith.constant 0 : index
    %c0_61 = arith.constant 0 : index
    %122 = vector.load %arg20[%c0_58, %c2_59, %c0_60, %c0_61] : memref<2x3x8x32xf32, #tpu.memory_space<vmem>>, vector<2x1x8x32xf32>
    %123 = vector.shape_cast %122 : vector<2x1x8x32xf32> to vector<2x8x32xf32>
    %124 = arith.addf %123, %121 : vector<2x8x32xf32>
    %c0_62 = arith.constant 0 : index
    %c2_63 = arith.constant 2 : index
    %c0_64 = arith.constant 0 : index
    %c0_65 = arith.constant 0 : index
    %125 = vector.load %arg20[%c0_62, %c2_63, %c0_64, %c0_65] : memref<2x3x8x32xf32, #tpu.memory_space<vmem>>, vector<2x1x8x32xf32>
    %126 = vector.shape_cast %125 : vector<2x1x8x32xf32> to vector<2x8x32xf32>
    %127 = vector.shape_cast %124 : vector<2x8x32xf32> to vector<2x1x8x32xf32>
    tpu.vector_store %arg20[%c0_62, %c2_63, %c0_64, %c0_65], %127 {strides = array<i32>} : memref<2x3x8x32xf32, #tpu.memory_space<vmem>>, vector<2x1x8x32xf32>,
    %128 = vector.broadcast %95 : vector<1x1x32xf32> to vector<2x8x32xf32>
    %129 = arith.mulf %14, %128 : vector<2x8x32xf32>
    "tpu.trace_start"() <{level = 10 : i32, message = "tnd,tmd->tnm"}> : () -> ()
    %cst_66 = arith.constant dense<0.000000e+00> : vector<2x8x8xf32>
    %130 = tpu.matmul %129, %16, %cst_66 {dimension_numbers = #tpu.dot_dimension_numbers<[2], [2], [1], [1], [0, 0, 0, 1, 1, 1], [0], [0]>} : vector<2x8x32xf32>, vector<2x8x32xf32>, vector<2x8x8xf32> -> vector<2x8x8xf32>
    "tpu.trace_stop"() : () -> ()
    %cst_67 = arith.constant 0.353553385 : f32
    %131 = vector.broadcast %cst_67 : f32 to vector<2x8x8xf32>
    %132 = arith.mulf %130, %131 : vector<2x8x8xf32>
    %133 = math.tanh %132 : vector<2x8x8xf32>
    %cst_68 = arith.constant 2.82842731 : f32
    %134 = vector.broadcast %cst_68 : f32 to vector<2x8x8xf32>
    %135 = arith.mulf %133, %134 : vector<2x8x8xf32>
    %136 = vector.broadcast %95 : vector<1x1x32xf32> to vector<2x8x32xf32>
    %137 = arith.mulf %18, %136 : vector<2x8x32xf32>
    "tpu.trace_start"() <{level = 10 : i32, message = "tnm,tmd->tnd"}> : () -> ()
    %cst_69 = arith.constant dense<0.000000e+00> : vector<2x8x32xf32>
    %138 = tpu.matmul %135, %137, %cst_69 {dimension_numbers = #tpu.dot_dimension_numbers<[2], [1], [1], [2], [0, 0, 0, 1, 1, 2], [0], [0]>} : vector<2x8x8xf32>, vector<2x8x32xf32>, vector<2x8x32xf32> -> vector<2x8x32xf32>
    "tpu.trace_stop"() : () -> ()
    %c0_70 = arith.constant 0 : index
    %c0_71 = arith.constant 0 : index
    %c0_72 = arith.constant 0 : index
    %139 = vector.load %arg21[%c0_70, %c0_71, %c0_72] : memref<2x8x32xf32, #tpu.memory_space<vmem>>, vector<2x8x32xf32>
    %140 = arith.addf %139, %138 : vector<2x8x32xf32>
    %c0_73 = arith.constant 0 : index
    %c0_74 = arith.constant 0 : index
    %c0_75 = arith.constant 0 : index
    %141 = vector.load %arg21[%c0_73, %c0_74, %c0_75] : memref<2x8x32xf32, #tpu.memory_space<vmem>>, vector<2x8x32xf32>
    tpu.vector_store %arg21[%c0_73, %c0_74, %c0_75], %140 {strides = array<i32>} : memref<2x8x32xf32, #tpu.memory_space<vmem>>, vector<2x8x32xf32>,
    %c16_i32_76 = arith.constant 16 : i32
    %142 = vector.broadcast %c16_i32_76 : i32 to vector<1x1x32xi32>
    %143 = arith.cmpi sge, %46, %142 : vector<1x1x32xi32>
    %c24_i32 = arith.constant 24 : i32
    %144 = vector.broadcast %c24_i32 : i32 to vector<1x1x32xi32>
    %145 = arith.cmpi slt, %46, %144 : vector<1x1x32xi32>
    %146 = arith.andi %143, %145 : vector<1x1x32xi1>
    %147 = arith.extui %146 : vector<1x1x32xi1> to vector<1x1x32xi32>
    %148 = arith.sitofp %147 : vector<1x1x32xi32> to vector<1x1x32xf32>
    %149 = vector.broadcast %148 : vector<1x1x32xf32> to vector<2x8x32xf32>
    %150 = arith.mulf %8, %149 : vector<2x8x32xf32>
    "tpu.trace_start"() <{level = 10 : i32, message = "tnd,tmd->tnm"}> : () -> ()
    %cst_77 = arith.constant dense<0.000000e+00> : vector<2x8x8xf32>
    %151 = tpu.matmul %150, %10, %cst_77 {dimension_numbers = #tpu.dot_dimension_numbers<[2], [2], [1], [1], [0, 0, 0, 1, 1, 1], [0], [0]>} : vector<2x8x32xf32>, vector<2x8x32xf32>, vector<2x8x8xf32> -> vector<2x8x8xf32>
    "tpu.trace_stop"() : () -> ()
    %cst_78 = arith.constant 0.353553385 : f32
    %152 = vector.broadcast %cst_78 : f32 to vector<2x8x8xf32>
    %153 = arith.mulf %151, %152 : vector<2x8x8xf32>
    %154 = math.tanh %153 : vector<2x8x8xf32>
    %155 = vector.broadcast %148 : vector<1x1x32xf32> to vector<2x8x32xf32>
    %156 = arith.mulf %12, %155 : vector<2x8x32xf32>
    %157 = arith.mulf %154, %29 : vector<2x8x8xf32>
    "tpu.trace_start"() <{level = 10 : i32, message = "tnm,tmd->tnd"}> : () -> ()
    %cst_79 = arith.constant dense<0.000000e+00> : vector<2x8x32xf32>
    %158 = tpu.matmul %157, %156, %cst_79 {dimension_numbers = #tpu.dot_dimension_numbers<[2], [1], [1], [2], [0, 0, 0, 1, 1, 2], [0], [0]>} : vector<2x8x8xf32>, vector<2x8x32xf32>, vector<2x8x32xf32> -> vector<2x8x32xf32>
    "tpu.trace_stop"() : () -> ()
    %c0_80 = arith.constant 0 : index
    %c0_81 = arith.constant 0 : index
    %c0_82 = arith.constant 0 : index
    %c0_83 = arith.constant 0 : index
    %159 = vector.load %arg20[%c0_80, %c0_81, %c0_82, %c0_83] : memref<2x3x8x32xf32, #tpu.memory_space<vmem>>, vector<2x1x8x32xf32>
    %160 = vector.shape_cast %159 : vector<2x1x8x32xf32> to vector<2x8x32xf32>
    %161 = arith.addf %160, %158 : vector<2x8x32xf32>
    %c0_84 = arith.constant 0 : index
    %c0_85 = arith.constant 0 : index
    %c0_86 = arith.constant 0 : index
    %c0_87 = arith.constant 0 : index
    %162 = vector.load %arg20[%c0_84, %c0_85, %c0_86, %c0_87] : memref<2x3x8x32xf32, #tpu.memory_space<vmem>>, vector<2x1x8x32xf32>
    %163 = vector.shape_cast %162 : vector<2x1x8x32xf32> to vector<2x8x32xf32>
    %164 = vector.shape_cast %161 : vector<2x8x32xf32> to vector<2x1x8x32xf32>
    tpu.vector_store %arg20[%c0_84, %c0_85, %c0_86, %c0_87], %164 {strides = array<i32>} : memref<2x3x8x32xf32, #tpu.memory_space<vmem>>, vector<2x1x8x32xf32>,
    %165 = arith.mulf %154, %37 : vector<2x8x8xf32>
    "tpu.trace_start"() <{level = 10 : i32, message = "tnm,tmd->tnd"}> : () -> ()
    %cst_88 = arith.constant dense<0.000000e+00> : vector<2x8x32xf32>
    %166 = tpu.matmul %165, %156, %cst_88 {dimension_numbers = #tpu.dot_dimension_numbers<[2], [1], [1], [2], [0, 0, 0, 1, 1, 2], [0], [0]>} : vector<2x8x8xf32>, vector<2x8x32xf32>, vector<2x8x32xf32> -> vector<2x8x32xf32>
    "tpu.trace_stop"() : () -> ()
    %c0_89 = arith.constant 0 : index
    %c1_90 = arith.constant 1 : index
    %c0_91 = arith.constant 0 : index
    %c0_92 = arith.constant 0 : index
    %167 = vector.load %arg20[%c0_89, %c1_90, %c0_91, %c0_92] : memref<2x3x8x32xf32, #tpu.memory_space<vmem>>, vector<2x1x8x32xf32>
    %168 = vector.shape_cast %167 : vector<2x1x8x32xf32> to vector<2x8x32xf32>
    %169 = arith.addf %168, %166 : vector<2x8x32xf32>
    %c0_93 = arith.constant 0 : index
    %c1_94 = arith.constant 1 : index
    %c0_95 = arith.constant 0 : index
    %c0_96 = arith.constant 0 : index
    %170 = vector.load %arg20[%c0_93, %c1_94, %c0_95, %c0_96] : memref<2x3x8x32xf32, #tpu.memory_space<vmem>>, vector<2x1x8x32xf32>
    %171 = vector.shape_cast %170 : vector<2x1x8x32xf32> to vector<2x8x32xf32>
    %172 = vector.shape_cast %169 : vector<2x8x32xf32> to vector<2x1x8x32xf32>
    tpu.vector_store %arg20[%c0_93, %c1_94, %c0_95, %c0_96], %172 {strides = array<i32>} : memref<2x3x8x32xf32, #tpu.memory_space<vmem>>, vector<2x1x8x32xf32>,
    %173 = arith.mulf %154, %45 : vector<2x8x8xf32>
    "tpu.trace_start"() <{level = 10 : i32, message = "tnm,tmd->tnd"}> : () -> ()
    %cst_97 = arith.constant dense<0.000000e+00> : vector<2x8x32xf32>
    %174 = tpu.matmul %173, %156, %cst_97 {dimension_numbers = #tpu.dot_dimension_numbers<[2], [1], [1], [2], [0, 0, 0, 1, 1, 2], [0], [0]>} : vector<2x8x8xf32>, vector<2x8x32xf32>, vector<2x8x32xf32> -> vector<2x8x32xf32>
    "tpu.trace_stop"() : () -> ()
    %c0_98 = arith.constant 0 : index
    %c2_99 = arith.constant 2 : index
    %c0_100 = arith.constant 0 : index
    %c0_101 = arith.constant 0 : index
    %175 = vector.load %arg20[%c0_98, %c2_99, %c0_100, %c0_101] : memref<2x3x8x32xf32, #tpu.memory_space<vmem>>, vector<2x1x8x32xf32>
    %176 = vector.shape_cast %175 : vector<2x1x8x32xf32> to vector<2x8x32xf32>
    %177 = arith.addf %176, %174 : vector<2x8x32xf32>
    %c0_102 = arith.constant 0 : index
    %c2_103 = arith.constant 2 : index
    %c0_104 = arith.constant 0 : index
    %c0_105 = arith.constant 0 : index
    %178 = vector.load %arg20[%c0_102, %c2_103, %c0_104, %c0_105] : memref<2x3x8x32xf32, #tpu.memory_space<vmem>>, vector<2x1x8x32xf32>
    %179 = vector.shape_cast %178 : vector<2x1x8x32xf32> to vector<2x8x32xf32>
    %180 = vector.shape_cast %177 : vector<2x8x32xf32> to vector<2x1x8x32xf32>
    tpu.vector_store %arg20[%c0_102, %c2_103, %c0_104, %c0_105], %180 {strides = array<i32>} : memref<2x3x8x32xf32, #tpu.memory_space<vmem>>, vector<2x1x8x32xf32>,
    %181 = vector.broadcast %148 : vector<1x1x32xf32> to vector<2x8x32xf32>
    %182 = arith.mulf %14, %181 : vector<2x8x32xf32>
    "tpu.trace_start"() <{level = 10 : i32, message = "tnd,tmd->tnm"}> : () -> ()
    %cst_106 = arith.constant dense<0.000000e+00> : vector<2x8x8xf32>
    %183 = tpu.matmul %182, %16, %cst_106 {dimension_numbers = #tpu.dot_dimension_numbers<[2], [2], [1], [1], [0, 0, 0, 1, 1, 1], [0], [0]>} : vector<2x8x32xf32>, vector<2x8x32xf32>, vector<2x8x8xf32> -> vector<2x8x8xf32>
    "tpu.trace_stop"() : () -> ()
    %cst_107 = arith.constant 0.353553385 : f32
    %184 = vector.broadcast %cst_107 : f32 to vector<2x8x8xf32>
    %185 = arith.mulf %183, %184 : vector<2x8x8xf32>
    %186 = math.tanh %185 : vector<2x8x8xf32>
    %cst_108 = arith.constant 2.82842731 : f32
    %187 = vector.broadcast %cst_108 : f32 to vector<2x8x8xf32>
    %188 = arith.mulf %186, %187 : vector<2x8x8xf32>
    %189 = vector.broadcast %148 : vector<1x1x32xf32> to vector<2x8x32xf32>
    %190 = arith.mulf %18, %189 : vector<2x8x32xf32>
    "tpu.trace_start"() <{level = 10 : i32, message = "tnm,tmd->tnd"}> : () -> ()
    %cst_109 = arith.constant dense<0.000000e+00> : vector<2x8x32xf32>
    %191 = tpu.matmul %188, %190, %cst_109 {dimension_numbers = #tpu.dot_dimension_numbers<[2], [1], [1], [2], [0, 0, 0, 1, 1, 2], [0], [0]>} : vector<2x8x8xf32>, vector<2x8x32xf32>, vector<2x8x32xf32> -> vector<2x8x32xf32>
    "tpu.trace_stop"() : () -> ()
    %c0_110 = arith.constant 0 : index
    %c0_111 = arith.constant 0 : index
    %c0_112 = arith.constant 0 : index
    %192 = vector.load %arg21[%c0_110, %c0_111, %c0_112] : memref<2x8x32xf32, #tpu.memory_space<vmem>>, vector<2x8x32xf32>
    %193 = arith.addf %192, %191 : vector<2x8x32xf32>
    %c0_113 = arith.constant 0 : index
    %c0_114 = arith.constant 0 : index
    %c0_115 = arith.constant 0 : index
    %194 = vector.load %arg21[%c0_113, %c0_114, %c0_115] : memref<2x8x32xf32, #tpu.memory_space<vmem>>, vector<2x8x32xf32>
    tpu.vector_store %arg21[%c0_113, %c0_114, %c0_115], %193 {strides = array<i32>} : memref<2x8x32xf32, #tpu.memory_space<vmem>>, vector<2x8x32xf32>,
    %c24_i32_116 = arith.constant 24 : i32
    %195 = vector.broadcast %c24_i32_116 : i32 to vector<1x1x32xi32>
    %196 = arith.cmpi sge, %46, %195 : vector<1x1x32xi32>
    %c32_i32 = arith.constant 32 : i32
    %197 = vector.broadcast %c32_i32 : i32 to vector<1x1x32xi32>
    %198 = arith.cmpi slt, %46, %197 : vector<1x1x32xi32>
    %199 = arith.andi %196, %198 : vector<1x1x32xi1>
    %200 = arith.extui %199 : vector<1x1x32xi1> to vector<1x1x32xi32>
    %201 = arith.sitofp %200 : vector<1x1x32xi32> to vector<1x1x32xf32>
    %202 = vector.broadcast %201 : vector<1x1x32xf32> to vector<2x8x32xf32>
    %203 = arith.mulf %8, %202 : vector<2x8x32xf32>
    "tpu.trace_start"() <{level = 10 : i32, message = "tnd,tmd->tnm"}> : () -> ()
    %cst_117 = arith.constant dense<0.000000e+00> : vector<2x8x8xf32>
    %204 = tpu.matmul %203, %10, %cst_117 {dimension_numbers = #tpu.dot_dimension_numbers<[2], [2], [1], [1], [0, 0, 0, 1, 1, 1], [0], [0]>} : vector<2x8x32xf32>, vector<2x8x32xf32>, vector<2x8x8xf32> -> vector<2x8x8xf32>
    "tpu.trace_stop"() : () -> ()
    %cst_118 = arith.constant 0.353553385 : f32
    %205 = vector.broadcast %cst_118 : f32 to vector<2x8x8xf32>
    %206 = arith.mulf %204, %205 : vector<2x8x8xf32>
    %207 = math.tanh %206 : vector<2x8x8xf32>
    %208 = vector.broadcast %201 : vector<1x1x32xf32> to vector<2x8x32xf32>
    %209 = arith.mulf %12, %208 : vector<2x8x32xf32>
    %210 = arith.mulf %207, %29 : vector<2x8x8xf32>
    "tpu.trace_start"() <{level = 10 : i32, message = "tnm,tmd->tnd"}> : () -> ()
    %cst_119 = arith.constant dense<0.000000e+00> : vector<2x8x32xf32>
    %211 = tpu.matmul %210, %209, %cst_119 {dimension_numbers = #tpu.dot_dimension_numbers<[2], [1], [1], [2], [0, 0, 0, 1, 1, 2], [0], [0]>} : vector<2x8x8xf32>, vector<2x8x32xf32>, vector<2x8x32xf32> -> vector<2x8x32xf32>
    "tpu.trace_stop"() : () -> ()
    %c0_120 = arith.constant 0 : index
    %c0_121 = arith.constant 0 : index
    %c0_122 = arith.constant 0 : index
    %c0_123 = arith.constant 0 : index
    %212 = vector.load %arg20[%c0_120, %c0_121, %c0_122, %c0_123] : memref<2x3x8x32xf32, #tpu.memory_space<vmem>>, vector<2x1x8x32xf32>
    %213 = vector.shape_cast %212 : vector<2x1x8x32xf32> to vector<2x8x32xf32>
    %214 = arith.addf %213, %211 : vector<2x8x32xf32>
    %c0_124 = arith.constant 0 : index
    %c0_125 = arith.constant 0 : index
    %c0_126 = arith.constant 0 : index
    %c0_127 = arith.constant 0 : index
    %215 = vector.load %arg20[%c0_124, %c0_125, %c0_126, %c0_127] : memref<2x3x8x32xf32, #tpu.memory_space<vmem>>, vector<2x1x8x32xf32>
    %216 = vector.shape_cast %215 : vector<2x1x8x32xf32> to vector<2x8x32xf32>
    %217 = vector.shape_cast %214 : vector<2x8x32xf32> to vector<2x1x8x32xf32>
    tpu.vector_store %arg20[%c0_124, %c0_125, %c0_126, %c0_127], %217 {strides = array<i32>} : memref<2x3x8x32xf32, #tpu.memory_space<vmem>>, vector<2x1x8x32xf32>,
    %218 = arith.mulf %207, %37 : vector<2x8x8xf32>
    "tpu.trace_start"() <{level = 10 : i32, message = "tnm,tmd->tnd"}> : () -> ()
    %cst_128 = arith.constant dense<0.000000e+00> : vector<2x8x32xf32>
    %219 = tpu.matmul %218, %209, %cst_128 {dimension_numbers = #tpu.dot_dimension_numbers<[2], [1], [1], [2], [0, 0, 0, 1, 1, 2], [0], [0]>} : vector<2x8x8xf32>, vector<2x8x32xf32>, vector<2x8x32xf32> -> vector<2x8x32xf32>
    "tpu.trace_stop"() : () -> ()
    %c0_129 = arith.constant 0 : index
    %c1_130 = arith.constant 1 : index
    %c0_131 = arith.constant 0 : index
    %c0_132 = arith.constant 0 : index
    %220 = vector.load %arg20[%c0_129, %c1_130, %c0_131, %c0_132] : memref<2x3x8x32xf32, #tpu.memory_space<vmem>>, vector<2x1x8x32xf32>
    %221 = vector.shape_cast %220 : vector<2x1x8x32xf32> to vector<2x8x32xf32>
    %222 = arith.addf %221, %219 : vector<2x8x32xf32>
    %c0_133 = arith.constant 0 : index
    %c1_134 = arith.constant 1 : index
    %c0_135 = arith.constant 0 : index
    %c0_136 = arith.constant 0 : index
    %223 = vector.load %arg20[%c0_133, %c1_134, %c0_135, %c0_136] : memref<2x3x8x32xf32, #tpu.memory_space<vmem>>, vector<2x1x8x32xf32>
    %224 = vector.shape_cast %223 : vector<2x1x8x32xf32> to vector<2x8x32xf32>
    %225 = vector.shape_cast %222 : vector<2x8x32xf32> to vector<2x1x8x32xf32>
    tpu.vector_store %arg20[%c0_133, %c1_134, %c0_135, %c0_136], %225 {strides = array<i32>} : memref<2x3x8x32xf32, #tpu.memory_space<vmem>>, vector<2x1x8x32xf32>,
    %226 = arith.mulf %207, %45 : vector<2x8x8xf32>
    "tpu.trace_start"() <{level = 10 : i32, message = "tnm,tmd->tnd"}> : () -> ()
    %cst_137 = arith.constant dense<0.000000e+00> : vector<2x8x32xf32>
    %227 = tpu.matmul %226, %209, %cst_137 {dimension_numbers = #tpu.dot_dimension_numbers<[2], [1], [1], [2], [0, 0, 0, 1, 1, 2], [0], [0]>} : vector<2x8x8xf32>, vector<2x8x32xf32>, vector<2x8x32xf32> -> vector<2x8x32xf32>
    "tpu.trace_stop"() : () -> ()
    %c0_138 = arith.constant 0 : index
    %c2_139 = arith.constant 2 : index
    %c0_140 = arith.constant 0 : index
    %c0_141 = arith.constant 0 : index
    %228 = vector.load %arg20[%c0_138, %c2_139, %c0_140, %c0_141] : memref<2x3x8x32xf32, #tpu.memory_space<vmem>>, vector<2x1x8x32xf32>
    %229 = vector.shape_cast %228 : vector<2x1x8x32xf32> to vector<2x8x32xf32>
    %230 = arith.addf %229, %227 : vector<2x8x32xf32>
    %c0_142 = arith.constant 0 : index
    %c2_143 = arith.constant 2 : index
    %c0_144 = arith.constant 0 : index
    %c0_145 = arith.constant 0 : index
    %231 = vector.load %arg20[%c0_142, %c2_143, %c0_144, %c0_145] : memref<2x3x8x32xf32, #tpu.memory_space<vmem>>, vector<2x1x8x32xf32>
    %232 = vector.shape_cast %231 : vector<2x1x8x32xf32> to vector<2x8x32xf32>
    %233 = vector.shape_cast %230 : vector<2x8x32xf32> to vector<2x1x8x32xf32>
    tpu.vector_store %arg20[%c0_142, %c2_143, %c0_144, %c0_145], %233 {strides = array<i32>} : memref<2x3x8x32xf32, #tpu.memory_space<vmem>>, vector<2x1x8x32xf32>,
    %234 = vector.broadcast %201 : vector<1x1x32xf32> to vector<2x8x32xf32>
    %235 = arith.mulf %14, %234 : vector<2x8x32xf32>
    "tpu.trace_start"() <{level = 10 : i32, message = "tnd,tmd->tnm"}> : () -> ()
    %cst_146 = arith.constant dense<0.000000e+00> : vector<2x8x8xf32>
    %236 = tpu.matmul %235, %16, %cst_146 {dimension_numbers = #tpu.dot_dimension_numbers<[2], [2], [1], [1], [0, 0, 0, 1, 1, 1], [0], [0]>} : vector<2x8x32xf32>, vector<2x8x32xf32>, vector<2x8x8xf32> -> vector<2x8x8xf32>
    "tpu.trace_stop"() : () -> ()
    %cst_147 = arith.constant 0.353553385 : f32
    %237 = vector.broadcast %cst_147 : f32 to vector<2x8x8xf32>
    %238 = arith.mulf %236, %237 : vector<2x8x8xf32>
    %239 = math.tanh %238 : vector<2x8x8xf32>
    %cst_148 = arith.constant 2.82842731 : f32
    %240 = vector.broadcast %cst_148 : f32 to vector<2x8x8xf32>
    %241 = arith.mulf %239, %240 : vector<2x8x8xf32>
    %242 = vector.broadcast %201 : vector<1x1x32xf32> to vector<2x8x32xf32>
    %243 = arith.mulf %18, %242 : vector<2x8x32xf32>
    "tpu.trace_start"() <{level = 10 : i32, message = "tnm,tmd->tnd"}> : () -> ()
    %cst_149 = arith.constant dense<0.000000e+00> : vector<2x8x32xf32>
    %244 = tpu.matmul %241, %243, %cst_149 {dimension_numbers = #tpu.dot_dimension_numbers<[2], [1], [1], [2], [0, 0, 0, 1, 1, 2], [0], [0]>} : vector<2x8x8xf32>, vector<2x8x32xf32>, vector<2x8x32xf32> -> vector<2x8x32xf32>
    "tpu.trace_stop"() : () -> ()
    %c0_150 = arith.constant 0 : index
    %c0_151 = arith.constant 0 : index
    %c0_152 = arith.constant 0 : index
    %245 = vector.load %arg21[%c0_150, %c0_151, %c0_152] : memref<2x8x32xf32, #tpu.memory_space<vmem>>, vector<2x8x32xf32>
    %246 = arith.addf %245, %244 : vector<2x8x32xf32>
    %c0_153 = arith.constant 0 : index
    %c0_154 = arith.constant 0 : index
    %c0_155 = arith.constant 0 : index
    %247 = vector.load %arg21[%c0_153, %c0_154, %c0_155] : memref<2x8x32xf32, #tpu.memory_space<vmem>>, vector<2x8x32xf32>
    tpu.vector_store %arg21[%c0_153, %c0_154, %c0_155], %246 {strides = array<i32>} : memref<2x8x32xf32, #tpu.memory_space<vmem>>, vector<2x8x32xf32>,
    %c0_156 = arith.constant 0 : index
    %c0_157 = arith.constant 0 : index
    %c0_158 = arith.constant 0 : index
    %c0_159 = arith.constant 0 : index
    %248 = vector.load %arg20[%c0_156, %c0_157, %c0_158, %c0_159] : memref<2x3x8x32xf32, #tpu.memory_space<vmem>>, vector<2x3x8x32xf32>
    %249 = vector.shape_cast %248 : vector<2x3x8x32xf32> to vector<48x32xf32>
    %c0_160 = arith.constant 0 : index
    %c0_161 = arith.constant 0 : index
    %250 = vector.load %arg8[%c0_160, %c0_161] : memref<32x32xf32, #tpu.memory_space<vmem>>, vector<32x32xf32>
    %cst_162 = arith.constant dense<0.000000e+00> : vector<48x32xf32>
    %251 = tpu.matmul %249, %250, %cst_162 {dimension_numbers = #tpu.dot_dimension_numbers<[1], [0], [0], [1], [0, 0, 1, 1], [], []>} : vector<48x32xf32>, vector<32x32xf32>, vector<48x32xf32> -> vector<48x32xf32>
    %c0_163 = arith.constant 0 : index
    %c0_164 = arith.constant 0 : index
    %252 = vector.load %arg9[%c0_163, %c0_164] : memref<1x32xf32, #tpu.memory_space<vmem>>, vector<1x32xf32>
    %253 = vector.broadcast %252 : vector<1x32xf32> to vector<48x32xf32>
    %254 = arith.addf %251, %253 : vector<48x32xf32>
    %255 = arith.negf %254 : vector<48x32xf32>
    %256 = math.exp %255 : vector<48x32xf32>
    %cst_165 = arith.constant 1.000000e+00 : f32
    %257 = vector.broadcast %cst_165 : f32 to vector<48x32xf32>
    %258 = arith.addf %257, %256 : vector<48x32xf32>
    %259 = arith.divf %257, %258 : vector<48x32xf32>
    %260 = arith.mulf %254, %259 : vector<48x32xf32>
    %c0_166 = arith.constant 0 : index
    %c0_167 = arith.constant 0 : index
    %261 = vector.load %arg10[%c0_166, %c0_167] : memref<1x32xf32, #tpu.memory_space<vmem>>, vector<1x32xf32>
    %262 = vector.broadcast %261 : vector<1x32xf32> to vector<48x32xf32>
    %263 = arith.mulf %260, %262 : vector<48x32xf32>
    %cst_168 = arith.constant dense<0.000000e+00> : vector<48xf32>
    %264 = vector.multi_reduction <add>, %263, %cst_168 [1] : vector<48x32xf32> to vector<48xf32>
    %265 = vector.shape_cast %264 : vector<48xf32> to vector<48x1xf32>
    %c0_169 = arith.constant 0 : index
    %266 = memref.load %arg17[%c0_169] : memref<2xf32, #tpu.memory_space<smem>>
    %267 = vector.broadcast %266 : f32 to vector<48x1xf32>
    %268 = arith.addf %265, %267 : vector<48x1xf32>
    %269 = vector.shape_cast %268 : vector<48x1xf32> to vector<2x3x8x1xf32>
    %270 = vector.extract_strided_slice %269 {offsets = [0, 0, 0, 0], sizes = [2, 1, 8, 1], strides = [1, 1, 1, 1]} : vector<2x3x8x1xf32> to vector<2x1x8x1xf32>
    %271 = vector.shape_cast %270 : vector<2x1x8x1xf32> to vector<2x8x1xf32>
    %272 = vector.extract_strided_slice %269 {offsets = [0, 1, 0, 0], sizes = [2, 1, 8, 1], strides = [1, 1, 1, 1]} : vector<2x3x8x1xf32> to vector<2x1x8x1xf32>
    %273 = vector.shape_cast %272 : vector<2x1x8x1xf32> to vector<2x8x1xf32>
    %274 = vector.extract_strided_slice %269 {offsets = [0, 2, 0, 0], sizes = [2, 1, 8, 1], strides = [1, 1, 1, 1]} : vector<2x3x8x1xf32> to vector<2x1x8x1xf32>
    %275 = vector.shape_cast %274 : vector<2x1x8x1xf32> to vector<2x8x1xf32>
    %276 = tpu.concatenate %271, %273, %275 in 2 : vector<2x8x1xf32>, vector<2x8x1xf32>, vector<2x8x1xf32> -> vector<2x8x3xf32>
    %c0_170 = arith.constant 0 : index
    %c0_171 = arith.constant 0 : index
    %c0_172 = arith.constant 0 : index
    %277 = vector.load %arg21[%c0_170, %c0_171, %c0_172] : memref<2x8x32xf32, #tpu.memory_space<vmem>>, vector<2x8x32xf32>
    %278 = vector.shape_cast %277 : vector<2x8x32xf32> to vector<16x32xf32>
    %c0_173 = arith.constant 0 : index
    %c0_174 = arith.constant 0 : index
    %279 = vector.load %arg11[%c0_173, %c0_174] : memref<32x64xf32, #tpu.memory_space<vmem>>, vector<32x64xf32>
    %cst_175 = arith.constant dense<0.000000e+00> : vector<16x64xf32>
    %280 = tpu.matmul %1, %279, %cst_175 {dimension_numbers = #tpu.dot_dimension_numbers<[1], [0], [0], [1], [0, 0, 1, 1], [], []>} : vector<16x32xf32>, vector<32x64xf32>, vector<16x64xf32> -> vector<16x64xf32>
    %c0_176 = arith.constant 0 : index
    %c0_177 = arith.constant 0 : index
    %281 = vector.load %arg12[%c0_176, %c0_177] : memref<32x64xf32, #tpu.memory_space<vmem>>, vector<32x64xf32>
    %cst_178 = arith.constant dense<0.000000e+00> : vector<16x64xf32>
    %282 = tpu.matmul %278, %281, %cst_178 {dimension_numbers = #tpu.dot_dimension_numbers<[1], [0], [0], [1], [0, 0, 1, 1], [], []>} : vector<16x32xf32>, vector<32x64xf32>, vector<16x64xf32> -> vector<16x64xf32>
    %283 = arith.addf %280, %282 : vector<16x64xf32>
    %c0_179 = arith.constant 0 : index
    %c0_180 = arith.constant 0 : index
    %284 = vector.load %arg13[%c0_179, %c0_180] : memref<1x64xf32, #tpu.memory_space<vmem>>, vector<1x64xf32>
    %285 = vector.broadcast %284 : vector<1x64xf32> to vector<16x64xf32>
    %286 = arith.addf %283, %285 : vector<16x64xf32>
    %287 = arith.negf %286 : vector<16x64xf32>
    %288 = math.exp %287 : vector<16x64xf32>
    %cst_181 = arith.constant 1.000000e+00 : f32
    %289 = vector.broadcast %cst_181 : f32 to vector<16x64xf32>
    %290 = arith.addf %289, %288 : vector<16x64xf32>
    %291 = arith.divf %289, %290 : vector<16x64xf32>
    %292 = arith.mulf %286, %291 : vector<16x64xf32>
    %293 = vector.extract_strided_slice %292 {offsets = [0, 0], sizes = [16, 32], strides = [1, 1]} : vector<16x64xf32> to vector<16x32xf32>
    %294 = vector.extract_strided_slice %292 {offsets = [0, 32], sizes = [16, 32], strides = [1, 1]} : vector<16x64xf32> to vector<16x32xf32>
    %c0_182 = arith.constant 0 : index
    %c0_183 = arith.constant 0 : index
    %295 = vector.load %arg14[%c0_182, %c0_183] : memref<1x32xf32, #tpu.memory_space<vmem>>, vector<1x32xf32>
    %296 = vector.broadcast %295 : vector<1x32xf32> to vector<16x32xf32>
    %297 = arith.mulf %293, %296 : vector<16x32xf32>
    %cst_184 = arith.constant dense<0.000000e+00> : vector<16xf32>
    %298 = vector.multi_reduction <add>, %297, %cst_184 [1] : vector<16x32xf32> to vector<16xf32>
    %299 = vector.shape_cast %298 : vector<16xf32> to vector<16x1xf32>
    %c1_185 = arith.constant 1 : index
    %300 = memref.load %arg17[%c1_185] : memref<2xf32, #tpu.memory_space<smem>>
    %301 = vector.broadcast %300 : f32 to vector<16x1xf32>
    %302 = arith.addf %299, %301 : vector<16x1xf32>
    %c0_186 = arith.constant 0 : index
    %c0_187 = arith.constant 0 : index
    %303 = vector.load %arg15[%c0_186, %c0_187] : memref<32x32xf32, #tpu.memory_space<vmem>>, vector<32x32xf32>
    %cst_188 = arith.constant dense<0.000000e+00> : vector<16x32xf32>
    %304 = tpu.matmul %294, %303, %cst_188 {dimension_numbers = #tpu.dot_dimension_numbers<[1], [0], [0], [1], [0, 0, 1, 1], [], []>} : vector<16x32xf32>, vector<32x32xf32>, vector<16x32xf32> -> vector<16x32xf32>
    %c0_189 = arith.constant 0 : index
    %c0_190 = arith.constant 0 : index
    %305 = vector.load %arg16[%c0_189, %c0_190] : memref<1x32xf32, #tpu.memory_space<vmem>>, vector<1x32xf32>
    %306 = vector.broadcast %305 : vector<1x32xf32> to vector<16x32xf32>
    %307 = arith.addf %304, %306 : vector<16x32xf32>
    %c0_191 = arith.constant 0 : index
    %c0_192 = arith.constant 0 : index
    %c0_193 = arith.constant 0 : index
    %308 = vector.load %arg4[%c0_191, %c0_192, %c0_193] : memref<2x8x3xf32, #tpu.memory_space<vmem>>, vector<2x8x3xf32>
    %309 = arith.addf %308, %276 : vector<2x8x3xf32>
    %310 = vector.shape_cast %302 : vector<16x1xf32> to vector<2x8x1xf32>
    %311 = vector.broadcast %310 : vector<2x8x1xf32> to vector<2x8x3xf32>
    %312 = arith.mulf %309, %311 : vector<2x8x3xf32>
    %c0_194 = arith.constant 0 : index
    %c0_195 = arith.constant 0 : index
    %c0_196 = arith.constant 0 : index
    %313 = vector.load %arg18[%c0_194, %c0_195, %c0_196] : memref<2x8x3xf32, #tpu.memory_space<vmem>>, vector<2x8x3xf32>
    tpu.vector_store %arg18[%c0_194, %c0_195, %c0_196], %312 {strides = array<i32>} : memref<2x8x3xf32, #tpu.memory_space<vmem>>, vector<2x8x3xf32>,
    %314 = vector.shape_cast %307 : vector<16x32xf32> to vector<2x8x32xf32>
    %c0_197 = arith.constant 0 : index
    %c0_198 = arith.constant 0 : index
    %c0_199 = arith.constant 0 : index
    %315 = vector.load %arg19[%c0_197, %c0_198, %c0_199] : memref<2x8x32xf32, #tpu.memory_space<vmem>>, vector<2x8x32xf32>
    tpu.vector_store %arg19[%c0_197, %c0_198, %c0_199], %314 {strides = array<i32>} : memref<2x8x32xf32, #tpu.memory_space<vmem>>, vector<2x8x32xf32>,
    return
  }
  func.func @transform_0(%arg0: i32) -> (i32, i32, i32) {
    %c0_i32 = arith.constant 0 : i32
    %c0_i32_0 = arith.constant 0 : i32
    %c0_i32_1 = arith.constant 0 : i32
    return %arg0, %c0_i32, %c0_i32_0 : i32, i32, i32
  }
  func.func @transform_1(%arg0: i32) -> (i32, i32, i32) {
    %c0_i32 = arith.constant 0 : i32
    %c0_i32_0 = arith.constant 0 : i32
    %c0_i32_1 = arith.constant 0 : i32
    return %arg0, %c0_i32, %c0_i32_0 : i32, i32, i32
  }
  func.func @transform_2(%arg0: i32) -> (i32, i32, i32) {
    %c0_i32 = arith.constant 0 : i32
    %c0_i32_0 = arith.constant 0 : i32
    %c0_i32_1 = arith.constant 0 : i32
    return %arg0, %c0_i32, %c0_i32_0 : i32, i32, i32
  }
  func.func @transform_3(%arg0: i32) -> (i32, i32, i32) {
    %c0_i32 = arith.constant 0 : i32
    %c0_i32_0 = arith.constant 0 : i32
    %c0_i32_1 = arith.constant 0 : i32
    return %arg0, %c0_i32, %c0_i32_0 : i32, i32, i32
  }
  func.func @transform_4(%arg0: i32) -> (i32, i32) {
    %c0_i32 = arith.constant 0 : i32
    %c0_i32_0 = arith.constant 0 : i32
    %c0_i32_1 = arith.constant 0 : i32
    return %c0_i32, %c0_i32_0 : i32, i32
  }
  func.func @transform_5(%arg0: i32) -> (i32, i32) {
    %c0_i32 = arith.constant 0 : i32
    %c0_i32_0 = arith.constant 0 : i32
    %c0_i32_1 = arith.constant 0 : i32
    return %c0_i32, %c0_i32_0 : i32, i32
  }
  func.func @transform_6(%arg0: i32) -> (i32, i32) {
    %c0_i32 = arith.constant 0 : i32
    %c0_i32_0 = arith.constant 0 : i32
    %c0_i32_1 = arith.constant 0 : i32
    return %c0_i32, %c0_i32_0 : i32, i32
  }
  func.func @transform_7(%arg0: i32) -> (i32, i32) {
    %c0_i32 = arith.constant 0 : i32
    %c0_i32_0 = arith.constant 0 : i32
    %c0_i32_1 = arith.constant 0 : i32
    return %c0_i32, %c0_i32_0 : i32, i32
  }
  func.func @transform_8(%arg0: i32) -> (i32, i32) {
    %c0_i32 = arith.constant 0 : i32
    %c0_i32_0 = arith.constant 0 : i32
    %c0_i32_1 = arith.constant 0 : i32
    return %c0_i32, %c0_i32_0 : i32, i32
  }
  func.func @transform_9(%arg0: i32) -> (i32, i32) {
    %c0_i32 = arith.constant 0 : i32
    %c0_i32_0 = arith.constant 0 : i32
    %c0_i32_1 = arith.constant 0 : i32
    return %c0_i32, %c0_i32_0 : i32, i32
  }
  func.func @transform_10(%arg0: i32) -> (i32, i32) {
    %c0_i32 = arith.constant 0 : i32
    %c0_i32_0 = arith.constant 0 : i32
    %c0_i32_1 = arith.constant 0 : i32
    return %c0_i32, %c0_i32_0 : i32, i32
  }
  func.func @transform_11(%arg0: i32) -> (i32, i32) {
    %c0_i32 = arith.constant 0 : i32
    %c0_i32_0 = arith.constant 0 : i32
    %c0_i32_1 = arith.constant 0 : i32
    return %c0_i32, %c0_i32_0 : i32, i32
  }
  func.func @transform_12(%arg0: i32) -> (i32, i32) {
    %c0_i32 = arith.constant 0 : i32
    %c0_i32_0 = arith.constant 0 : i32
    %c0_i32_1 = arith.constant 0 : i32
    return %c0_i32, %c0_i32_0 : i32, i32
  }
  func.func @transform_13(%arg0: i32) -> (i32, i32) {
    %c0_i32 = arith.constant 0 : i32
    %c0_i32_0 = arith.constant 0 : i32
    %c0_i32_1 = arith.constant 0 : i32
    return %c0_i32, %c0_i32_0 : i32, i32
  }
  func.func @transform_14(%arg0: i32) -> (i32, i32) {
    %c0_i32 = arith.constant 0 : i32
    %c0_i32_0 = arith.constant 0 : i32
    %c0_i32_1 = arith.constant 0 : i32
    return %c0_i32, %c0_i32_0 : i32, i32
  }
  func.func @transform_15(%arg0: i32) -> (i32, i32) {
    %c0_i32 = arith.constant 0 : i32
    %c0_i32_0 = arith.constant 0 : i32
    %c0_i32_1 = arith.constant 0 : i32
    return %c0_i32, %c0_i32_0 : i32, i32
  }
  func.func @transform_16(%arg0: i32) -> i32 {
    %c0_i32 = arith.constant 0 : i32
    %c0_i32_0 = arith.constant 0 : i32
    return %c0_i32 : i32
  }
  func.func @transform_17(%arg0: i32) -> (i32, i32, i32) {
    %c0_i32 = arith.constant 0 : i32
    %c0_i32_0 = arith.constant 0 : i32
    %c0_i32_1 = arith.constant 0 : i32
    return %arg0, %c0_i32, %c0_i32_0 : i32, i32, i32
  }
  func.func @transform_18(%arg0: i32) -> (i32, i32, i32) {
    %c0_i32 = arith.constant 0 : i32
    %c0_i32_0 = arith.constant 0 : i32
    %c0_i32_1 = arith.constant 0 : i32
    return %arg0, %c0_i32, %c0_i32_0 : i32, i32, i32
  }
}

</mosaic_0001>

<bundles_post_ra>
// kernel: global_update_forward.1
= control target key start
LH: loop header
LB: loop body
LE: loop exit
PB: predicated region body
PF: predicated region fallthrough
CT: control target
= control target key end

     0   :  { %s7016_s0 = inlined_call_operand.vmem [shape: f32[4,8,32], index: 0, kind: input, shape index: {}]   ;;  %s7017_s1 = inlined_call_operand.vmem [shape: f32[4,8,3], index: 1, kind: input, shape index: {}]   ;;  %s7018_s2 = inlined_call_operand.vmem [shape: f32[4,3,8], index: 2, kind: input, shape index: {}]   ;;  %s7019_s3 = inlined_call_operand.vmem [shape: f32[4,8,3], index: 3, kind: input, shape index: {}]   ;;  %s7020_s4 = inlined_call_operand.vmem [shape: f32[8,8], index: 4, kind: input, shape index: {}]   ;;  %s7021_s5 = inlined_call_operand.vmem [shape: f32[32,192], index: 5, kind: input, shape index: {}]   ;;  %s7022_s6 = inlined_call_operand.vmem [shape: f32[1,192], index: 6, kind: input, shape index: {}]   ;;  %s7023_s7 = inlined_call_operand.vmem [shape: f32[32,32], index: 7, kind: input, shape index: {}]   ;;  %s7024_s8 = inlined_call_operand.vmem [shape: f32[1,32], index: 8, kind: input, shape index: {}]   ;;  %s7025_s9 = inlined_call_operand.vmem [shape: f32[1,32], index: 9, kind: input, shape index: {}]   ;;  %s7026_s10 = inlined_call_operand.vmem [shape: f32[32,64], index: 10, kind: input, shape index: {}]   ;;  %s7027_s11 = inlined_call_operand.vmem [shape: f32[32,64], index: 11, kind: input, shape index: {}]   ;;  %s7028_s12 = inlined_call_operand.vmem [shape: f32[1,64], index: 12, kind: input, shape index: {}]   ;;  %s7029_s13 = inlined_call_operand.vmem [shape: f32[1,32], index: 13, kind: input, shape index: {}]   ;;  %s7030_s14 = inlined_call_operand.vmem [shape: f32[32,32], index: 14, kind: input, shape index: {}]   ;;  %s7031_s15 = inlined_call_operand.vmem [shape: f32[1,32], index: 15, kind: input, shape index: {}]   ;;  %s7032_s16 = inlined_call_operand.vmem [shape: f32[2], index: 16, kind: input, shape index: {}]   ;;  %s7033_s17 = inlined_call_operand.vmem [shape: f32[4,8,3], index: 17, kind: output, shape index: {0}]   ;;  %s7034_s18 = inlined_call_operand.hbm [shape: f32[4,8,32], index: 18, kind: output, shape index: {1}]  }
   0x1   :  { %7040 = sst [smem:[#allocation13_spill]] %s7016_s0 }
   0x2   :  { %7041 = sst [smem:[#allocation14_spill]] %s7017_s1 }
   0x3   :  { %7042 = sst [smem:[#allocation15_spill]] %s7018_s2 }
   0x4   :  { %7043 = sst [smem:[#allocation16_spill]] %s7021_s5 }
   0x5   :  { %7044 = sst [smem:[#allocation17_spill]] %s7032_s16 }
   0x6   :  { %24 = vsyncpa [#allocation6], 0 }
   0x7   :  { %25 = vsyncpa [#allocation5], 0 }
   0x8   :  { %27 = vsyncpa [#allocation5 + $0x1], 0  ;;  %s6228_s27 = smov 0   ;;  %s6230_s28 = smov 0  }
   0x9   :  { %s6232_s29 = smov 0   ;;  %s6234_s30 = smov 0  }
   0xa LB: > { %7045 = sst [smem:[#allocation10_spill]] %s6115_s29  ;;  %s6249_s0 = sadd.s32 4294967295, %s6119_s30   ;;  %s6119_s30 = sphi %s6234_s30, %s7057_s30   ;;  %s6115_s29 = sphi %s6232_s29, %s7059_s29   ;;  %s6111_s28 = sphi %s6230_s28, %s7061_s28   ;;  %s6107_s27 = sphi %s6228_s27, %s7060_s27  }
   0xb   : > { %s5375_s19 = sadd.s32 4294967294, %s6119_s30   ;;  %s6253_s1 = sadd.s32 1, %s6119_s30  }
   0xc   : > { %7046 = sst [smem:[#allocation11_spill]] %s6253_s1  ;;  %s443_s20 = sadd.s32 1, %s6115_s29 }
   0xd   : > { %s440_s21 = ssub.s32 %s6119_s30, %s6253_s1  ;;  %p453_p0 = scmp.ne.s32.totalorder %s6115_s29, %s6111_s28 }
   0xe   : > { %p441_p1 = scmp.eq.s32.totalorder %s440_s21, 0  ;;  %p454_p2 = scmp.eq.s32.totalorder %s6249_s0, 1 }
   0xf   : > { %p459_p3 = scmp.ne.s32.totalorder %s6111_s28, %s6107_s27  ;;  %p460_p4 = scmp.eq.s32.totalorder %s5375_s19, 1 }
  0x10   : > { %s6264_s22 = scalar_select %p441_p1, %s6115_s29, %s443_s20  }
  0x11   : > { %p6266_p5 = por %p454_p2, %p453_p0  ;;  %p6270_p6 = por %p460_p4, %p459_p3 }
  0x12   : > { %7047 = sst [smem:[#allocation12_spill]] %s6264_s22  ;;  %p5376_p7 = scmp.ge.s32.totalorder %s6119_s30, 1 }
  0x13   : > { %p467_p8 = scmp.lt.s32.totalorder %s6119_s30, 3  ;;  %p5922_p9 = scmp.eq.s32.totalorder %s6249_s0, 0 }
  0x14   : > { %s7051_s16 = sld [smem:[#allocation17_spill]] }
  0x15   : > { %p6277_p10 = pnand %p5376_p7, %p467_p8 }
  0x17   : > { %p5914_p11 = pneg %p6277_p10 }
  0x19   : > { %p5915_p12 = pnand %p5922_p9, %p5914_p11 }
  0x1a   : > { %s516_s19 = sshll.u32 %s7051_s16, 4  ;;  %s517_s19 = int_to_ptr.vmem [resolvable:$true] %s516_s19 }
  0x1b   : > { %s6040_s20 = scalar_lea.vmem %s517_s19, 16  ;;  %p6042_p0 = pneg %p5915_p12 }
  0x1c   : > { %p6041_p13 = scmp.ne.s32.totalorder %s517_s19, %s6040_s20  ;;  %p6048_p3 = scmp.lt.s32.totalorder %s517_s19, %s517_s19 }
  0x1d   : > { %p6049_p4 = scmp.lt.s32.totalorder %s6040_s20, %s6040_s20 }
  0x1e   : > { %p6043_p1 = pnand %p6042_p0, %p6041_p13 }
  0x1f   : > { %p6050_p7 = por %p6049_p4, %p6048_p3 }
  0x20   : > { %p6044_p2 = pneg %p6043_p1 }
  0x22   : > { %p6051_p8 = pnand %p6050_p7, %p6044_p2 }
  0x24   : > { %6054 = shalt.err (!%p6051_p8)
}
  0x25   : > { %s6121_s21 = smov [#allocation4]   ;;  %565 = sbr.rel (%p6277_p10) target bundleno = 2896 (0xb50), region = 88 }
  0x26   : > { %5917 = dma.vmem_to_smem (!%p5915_p12), %s517_s19, 16, %s6121_s21, [#allocation6]  }
  0x2a   : > { %6098 = dma.done.wait (%p5922_p9), [#allocation6], 16  }
  0x2b   : > { %6100 = vsyncadd (%p5922_p9), [#allocation6], 4294967280 }
  0x2c   : > { %571 = sfence }
  0x2d   : > { %s7052_s5 = sld [smem:[#allocation16_spill]]  ;;  %s5382_s24 = sshll.u32 %s6249_s0, 1  ;;  %v683_v3 = vlaneseq  ;;  %v6122_v5 = vmov 0.0   ;;  %v6123_v8 = vmov 0   ;;  %vm693_vm1 = vcmask 261120  }
  0x2e   : > { %764 = vmatprep.mubr.f32.mxu0 %v6122_v5  ;;  %p641_p9 = scmp.lt.s32.totalorder %s5382_s24, 3  ;;  %5969 = vset.pattern.permute.xlu1 %v6123_v8  ;;  %s7053_s20 = sld [smem:[#allocation13_spill]]  ;;  %v6126_v17 = vmov 1   ;;  %v6127_v18 = vmov 2   ;;  %vm6128_vm2 = vmmov 0   ;;  %vm1025_vm6 = vcmask 64512  }
  0x2f   : > { %v6311_v7 = vand.u32 127, %v683_v3  ;;  %5968 = vset.pattern.permute.xlu0 %v6123_v8  ;;  %5618 = vmatprep.subr.mxu1 %v6122_v5  ;;  %s6124_s22 = smov 64   ;;  %s6125_s26 = smov 96   ;;  %v6352_v19 = vshrl.u32 %v683_v3, 7  ;;  %v681_v21 = vld [vmem:[%s7022_s6] sm:$0x3] }
  0x30   : > { %s7063_s24 = smov (!%p641_p9, %s5382_s24), 3  ;;  %5620 = vmatprep.mubr.msk.f32.mxu1 %vm6128_vm2, %v6122_v5  ;;  %s7038_s16 = smov 32   ;;  %vm4896_vm13 = vcmask 7168   ;;  %vm4899_vm14 = vcmask 15360   ;;  %vm5212_vm15 = vcmask 23552  }
  0x31   : > { %vm847_vm0 = vcmp.lt.s32.totalorder %v6311_v7, 8  ;;  %s6327_s25 = sshll.u32 %s7063_s24, 3  ;;  %v6359_v20 = vsub.s32 0, %v6352_v19  ;;  %v689_v45 = vsub.s32 1, %v6352_v19  ;;  %vm1808_vm3 = vcmp.ge.s32.totalorder %v6311_v7, 8 }
  0x32   : > { %v6330_v12 = vsel %vm847_vm0, 1.0, %v6122_v5  ;;  %vm1809_vm4 = vcmp.lt.s32.totalorder %v6311_v7, 16  ;;  %vm2767_vm7 = vcmp.ge.s32.totalorder %v6311_v7, 16  ;;  %vm2768_vm8 = vcmp.lt.s32.totalorder %v6311_v7, 24  ;;  %s668_s21 = scalar_lea.vmem %s7033_s17, %s6327_s25 }
  0x33   : > { %v680_v0 = vld [vmem:[%s7052_s5 + $0x38] sm:$0xff]  ;;  %v679_v1 = vld [vmem:[%s7052_s5 + $0x30] sm:$0xff]  ;;  %v678_v2 = vld [vmem:[%s7052_s5 + $0x28] sm:$0xff]  ;;  %1014 = vrot.lane.b32.xlu1 %v6330_v12, %s6124_s22  ;;  %v686_v22 = vrot.slane %v681_v21, %v6359_v20  ;;  %v690_v47 = vrot.slane %v681_v21, %v689_v45  ;;  %vm3726_vm10 = vcmp.ge.s32.totalorder %v6311_v7, 24  ;;  %vm3727_vm11 = vcmp.lt.s32.totalorder %v6311_v7, 32 }
  0x34   : > { %724 = vmatprep.subr.mxu0 %v680_v0  ;;  %v677_v4 = vld [vmem:[%s7052_s5 + $0x20] sm:$0xff]  ;;  %v676_v6 = vld [vmem:[%s7052_s5 + $0x18] sm:$0xff]  ;;  %v675_v9 = vld [vmem:[%s7052_s5 + $0x10] sm:$0xff]  ;;  %s6336_s29 = scalar_lea.vmem %s7053_s20, %s6327_s25  ;;  %s5387_s20 = sshll.u32 %s7063_s24, 2 }
  0x35   : > { %725 = vmatpush1.msra.mxu0 %v679_v1  ;;  %v674_v10 = vld [vmem:[%s7052_s5 + $0x8] sm:$0xff]  ;;  %v673_v11 = vld [vmem:[%s7052_s5] sm:$0xff]  ;;  %s7054_s5 = sld [smem:[#allocation14_spill]]  ;;  %vm1810_vm5 = vmand %vm1808_vm3, %vm1809_vm4 }
  0x36   : > { %726 = vmatprep.subr.mxu0 %v678_v2  ;;  %v671_v13 = vld [vmem:[%s6336_s29] sm:$0xff]  ;;  %v672_v14 = vld [vmem:[%s6336_s29 + $0x8] sm:$0xff]  ;;  %v6433_v55 = vsel %vm1810_vm5, 1.0, %v6122_v5  ;;  %vm2769_vm9 = vmand %vm2767_vm7, %vm2768_vm8  ;;  %s6947_s24 = sld [smem:[#allocation4 + $0x1]] }
  0x37   : > { %727 = vmatpush1.msra.mxu0 %v677_v4  ;;  %1480 = vrot.lane.b32.xlu1 %v6330_v12, %s6125_s26  ;;  %vm3728_vm12 = vmand %vm3726_vm10, %vm3727_vm11 }
  0x38   : > { %728 = vmatprep.subr.mxu0 %v676_v6 }
  0x39   : > { %729 = vmatpush1.msra.mxu0 %v675_v9 }
  0x3a   : > { %730 = vmatprep.subr.mxu0 %v674_v10 }
  0x3b   : > { %731 = vmatpush1.msra.mxu0 %v673_v11  ;;  %s650_s1 = scalar_lea.vmem %s7054_s5, %s6327_s25  ;;  %s7055_s5 = sld [smem:[#allocation15_spill]] }
  0x3c   : > { %5392 = vmatmul.mubr.msk.f32.vlgmr.msra.gmra.mxu0 %vm693_vm1, %v671_v13  ;;  %5633 = vmatprep.subr.mxu0 %v6122_v5  ;;  %v779_v15 = vld [vmem:[%s650_s1 + $0x8] sm:$0xff]  ;;  %v778_v16 = vld [vmem:[%s650_s1] sm:$0xff] }
  0x3d   : > { %770 = vmatprep.mubr.f32.mxu0 %v6122_v5  ;;  %797 = vperm.xlu1 %5969, %v779_v15  }
  0x40   : > { %5393 = vmatmul.mubr.msk.f32.gmra.mxu0 %vm693_vm1, %v672_v14 }
  0x41   : > { %5970 = vset.pattern.permute.xlu1 %v6126_v17  ;;  %5635 = vmatprep.mubr.msk.f32.mxu0 %vm6128_vm2, %v6122_v5  ;;  %s656_s1 = scalar_lea.vmem %s7055_s5, %s5387_s20  ;;  %s662_s20 = scalar_lea.vmem %s7019_s3, %s6327_s25 }
  0x42   : > { %813 = vperm.xlu1 %5970, %v778_v16   ;;  %v780_v4 = vld [vmem:[%s656_s1] sm:$0x7]  ;;  %v781_v11 = vld [vmem:[%s656_s1 + $0x4] sm:$0x7]  ;;  %s637_s5 = sand.u32 1, %s6111_s28  }
  0x43   : > { %v785_v8 = vrot.slane %v780_v4, %v6359_v20  ;;  %v789_v14 = vrot.slane %v781_v11, %v6359_v20  ;;  %v811_v21 = vrot.slane %v781_v11, %v689_v45  ;;  %s5381_s1 = sshll.u32 %s637_s5, 4 }
  0x44   : > { %s639_s25 = scalar_lea.vmem [#allocation7], %s5381_s1  ;;  %s6130_s1 = smov [#allocation7]  }
  0x46   : > { %5972 = vset.pattern.permute.xlu1 %v6127_v18 }
  0x47   : > { %833 = vperm.xlu1 %5972, %v778_v16  }
  0x4b   : > { %837 = vperm.xlu1 %5972, %v779_v15  }
  0xa5   : > { %v1015_v26 = vpop.permute.xlu1 %1014 }
  0xa9   : > { %v1481_v30 = vpop.permute.xlu1 %1480 }
  0xb8   : > { %v6383_v34 = vpop.permute.xlu1 %797 }
  0xbd   : > { %v6385_v35 = vpop.permute.xlu1 %813 }
  0xc2   : > { %v6387_v36 = vpop.permute.xlu1 %833 }
  0xc6   : > { %v6391_v38 = vpop.permute.xlu1 %837 }
  0xfc   : > { %v766_v23 = vpop.f32.mrf.mxu0 }
  0xfd   : > { %v6365_v24 = vadd.f32 %v766_v23, %v686_v22 }
  0xfe   : > { %v768_v25 = vpop.f32.mrf.mxu0 }
  0xff   : > { %854 = vrot.lane.b32.xlu0 %v6365_v24, %s6125_s26  ;;  %v1017_v32 = vmul.f32 %v1015_v26, %v6365_v24  ;;  %v1483_v33 = vmul.f32 %v1481_v30, %v6365_v24  ;;  %v851_v39 = vmul.f32 %v6330_v12, %v6365_v24  ;;  %v6422_v50 = vadd.f32 %v768_v25, %v690_v47 }
 0x100   : > { %v772_v27 = vpop.f32.mrf.mxu0 }
 0x101   : > { %v6369_v28 = vadd.f32 %v772_v27, %v686_v22  ;;  %v801_v22 = vsub.f32 %v789_v14, %v6383_v34 }
 0x102   : > { %v774_v48 = vpop.f32.mrf.mxu0 }
 0x103   : > { %932 = vrot.lane.b32.xlu0 %v6369_v28, %s6125_s26  ;;  %v1018_v29 = vmul.f32 %v1015_v26, %v6369_v28  ;;  %v1484_v31 = vmul.f32 %v1481_v30, %v6369_v28  ;;  %v852_v42 = vmul.f32 %v6330_v12, %v6369_v28  ;;  %v6424_v51 = vadd.f32 %v774_v48, %v690_v47 }
 0x104   : > { %v6542_v48 = vsel %vm2769_vm9, 1.0, %v6122_v5 }
 0x105   : > { %1100 = vrot.lane.b32.xlu1 %v1018_v29, %s6124_s22 }
 0x107   : > { %792 = vperm.xlu0 %5968, %v778_v16   ;;  %v777_v16 = vld [vmem:[%s7020_s4] sm:$0xff] }
 0x108   : > { %v6471_v27 = vmul.f32 %v801_v22, %v777_v16 }
 0x109   : > { %1564 = vrot.lane.b32.xlu1 %v1484_v31, %s7038_s16 }
 0x10b   : > { %5971 = vset.pattern.permute.xlu0 %v6126_v17 }
 0x10c   : > { %817 = vperm.xlu0 %5971, %v779_v15   ;;  %v807_v15 = vrot.slane %v780_v4, %v689_v45 }
 0x10e   : > { %v820_v23 = vsub.f32 %v807_v15, %v6385_v35 }
 0x110   : > { %1022 = vrot.lane.b32.xlu0 %v1017_v32, %s6124_s22  ;;  %v6473_v29 = vmul.f32 %v820_v23, %v777_v16 }
 0x111   : > { %5973 = vset.pattern.permute.xlu0 %v6127_v18 }
 0x114   : > { %1486 = vrot.lane.b32.xlu0 %v1483_v33, %s7038_s16 }
 0x118   : > { %1647 = vrot.lane.b32.xlu0 %v6330_v12, %s7038_s16  ;;  %v826_v12 = vsub.s32 2, %v6352_v19 }
 0x11a   : > { %v827_v17 = vrot.slane %v780_v4, %v826_v12  ;;  %v831_v30 = vrot.slane %v781_v11, %v826_v12 }
 0x11c   : > { %v840_v19 = vsub.f32 %v827_v17, %v6387_v36  ;;  %v841_v36 = vsub.f32 %v831_v30, %v6391_v38 }
 0x11e   : > { %v6479_v32 = vmul.f32 %v840_v19, %v777_v16  ;;  %v6499_v38 = vmul.f32 %v841_v36, %v777_v16  ;;  %v1813_v19 = vmul.f32 %v6433_v55, %v6365_v24 }
 0x171   : > { %v6389_v37 = vpop.permute.xlu0 %854 }
 0x172   : > { %5619 = vmatpush3.xpose.msk.msra.mxu1 %vm693_vm1, %v6389_v37 }
 0x173   : > { %5623 = vmatprep.subr.mxu1 %v6122_v5 }
 0x175   : > { %v6398_v40 = vpop.permute.xlu0 %932  ;;  %5621 = vmatmul.mubr.msk.f32.vlgmr.msra.gmra.mxu1 %vm693_vm1, %v851_v39 }
 0x176   : > { %5624 = vmatpush3.xpose.msk.msra.mxu1 %vm693_vm1, %v6398_v40  ;;  %5625 = vmatprep.mubr.msk.f32.mxu1 %vm6128_vm2, %v6122_v5 }
 0x177   : > { %v6405_v41 = vpop.permute.xlu1 %1100  ;;  %5628 = vmatprep.subr.mxu1 %v6122_v5 }
 0x178   : > { %5634 = vmatpush3.msra.mxu0 %v6405_v41 }
 0x179   : > { %5626 = vmatmul.mubr.msk.f32.vlgmr.msra.gmra.mxu1 %vm693_vm1, %v852_v42  ;;  %5643 = vmatprep.subr.mxu0 %v6122_v5 }
 0x17a   : > { %5630 = vmatprep.mubr.msk.f32.mxu1 %vm6128_vm2, %v6122_v5 }
 0x17b   : > { %v6439_v56 = vpop.permute.xlu1 %1564 }
 0x182   : > { %v793_v43 = vpop.permute.xlu0 %792 }
 0x183   : > { %v800_v13 = vsub.f32 %v785_v8, %v793_v43 }
 0x185   : > { %v6465_v18 = vmul.f32 %v800_v13, %v777_v16 }
 0x187   : > { %v818_v44 = vpop.permute.xlu0 %817 }
 0x188   : > { %v821_v26 = vsub.f32 %v811_v21, %v818_v44 }
 0x18a   : > { %v6481_v33 = vmul.f32 %v821_v26, %v777_v16  ;;  %v1814_v26 = vmul.f32 %v6433_v55, %v6369_v28 }
 0x18b   : > { %v6416_v46 = vpop.permute.xlu0 %1022 }
 0x18c   : > { %5629 = vmatpush3.msra.mxu1 %v6416_v46 }
 0x18d   : > { %5638 = vmatprep.subr.mxu1 %v6122_v5 }
 0x18f   : > { %v6420_v49 = vpop.permute.xlu0 %1486 }
 0x193   : > { %v1648_v52 = vpop.permute.xlu0 %1647 }
 0x194   : > { %v1650_v53 = vmul.f32 %v1648_v52, %v6422_v50  ;;  %v1651_v54 = vmul.f32 %v1648_v52, %v6424_v51 }
 0x196   : > { %1730 = vrot.lane.b32.xlu0 %v1651_v54, %s6125_s26  ;;  %1653 = vrot.lane.b32.xlu1 %v1650_v53, %s6125_s26 }
 0x19a   : > { %2441 = vrot.lane.b32.xlu0 %v6433_v55, %s6125_s26  ;;  %1966 = vrot.lane.b32.xlu1 %v6433_v55, %s6124_s22 }
 0x208   : > { %v6441_v57 = vpop.permute.xlu0 %1730  ;;  %v6443_v58 = vpop.permute.xlu1 %1653 }
 0x20c   : > { %v1967_v59 = vpop.permute.xlu1 %1966  ;;  %v2442_v62 = vpop.permute.xlu0 %2441 }
 0x20d   : > { %v1969_v60 = vmul.f32 %v1967_v59, %v6365_v24  ;;  %v1970_v61 = vmul.f32 %v1967_v59, %v6369_v28  ;;  %v2444_v63 = vmul.f32 %v2442_v62, %v6365_v24  ;;  %v2445_v0 = vmul.f32 %v2442_v62, %v6369_v28 }
 0x20f   : > { %2051 = vrot.lane.b32.xlu0 %v1970_v61, %s6124_s22  ;;  %1974 = vrot.lane.b32.xlu1 %v1969_v60, %s6124_s22 }
 0x213   : > { %2522 = vrot.lane.b32.xlu0 %v2445_v0, %s7038_s16  ;;  %2447 = vrot.lane.b32.xlu1 %v2444_v63, %s7038_s16 }
 0x217   : > { %2602 = vrot.lane.b32.xlu1 %v6433_v55, %s7038_s16  ;;  %s7056_s16 = smov 32  }
 0x235   : > { %v927_v1 = vpop.f32.mrf.mxu1 }
 0x236   : > { %v1009_v2 = vmul.f32 0.35355338, %v927_v1 }
 0x237   : > { %v5622_v3 = vpop.f32.mrf.mxu1 }
 0x238   : > { %5974 = vtanh.f32 %v1009_v2 }
 0x239   : > { %v1005_v6 = vpop.f32.mrf.mxu1 }
 0x23a   : > { %v1010_v9 = vmul.f32 0.35355338, %v1005_v6 }
 0x23b   : > { %v5627_v10 = vpop.f32.mrf.mxu1 }
 0x23c   : > { %5976 = vtanh.f32 %v1010_v9 }
 0x245   : > { %v5975_v25 = vpop.eup %5974 }
 0x246   : > { %v1019_v20 = vmul.f32 %v5975_v25, %v6465_v18  ;;  %v1178_v35 = vmul.f32 %v5975_v25, %v6473_v29  ;;  %v1329_v42 = vmul.f32 %v5975_v25, %v6479_v32 }
 0x248   : > { %5631 = vmatmul.mubr.msk.f32.vlgmr.msra.gmra.mxu1 %vm1025_vm6, %v1019_v20 }
 0x249   : > { %v5977_v31 = vpop.eup %5976  ;;  %5639 = vmatpush3.msra.mxu1 %v6416_v46  ;;  %5640 = vmatprep.mubr.msk.f32.mxu1 %vm6128_vm2, %v6122_v5 }
 0x24a   : > { %5648 = vmatprep.subr.mxu1 %v6122_v5  ;;  %v1020_v34 = vmul.f32 %v5977_v31, %v6471_v27  ;;  %v1179_v39 = vmul.f32 %v5977_v31, %v6481_v33  ;;  %v1330_v43 = vmul.f32 %v5977_v31, %v6499_v38 }
 0x24c   : > { %5636 = vmatmul.mubr.msk.f32.vlgmr.msra.gmra.mxu0 %vm1025_vm6, %v1020_v34  ;;  %5641 = vmatmul.mubr.msk.f32.vlgmr.msra.gmra.mxu1 %vm1025_vm6, %v1178_v35  ;;  %v6609_v35 = vsel %vm3728_vm12, 1.0, %v6122_v5 }
 0x24d   : > { %5644 = vmatpush3.msra.mxu0 %v6405_v41  ;;  %5649 = vmatpush3.msra.mxu1 %v6416_v46 }
 0x24e   : > { %5645 = vmatprep.mubr.msk.f32.mxu0 %vm6128_vm2, %v6122_v5  ;;  %5650 = vmatprep.mubr.msk.f32.mxu1 %vm6128_vm2, %v6122_v5 }
 0x24f   : > { %5653 = vmatprep.subr.mxu0 %v6122_v5  ;;  %5658 = vmatprep.subr.mxu1 %v6122_v5 }
 0x250   : > { %5646 = vmatmul.mubr.msk.f32.vlgmr.msra.gmra.mxu0 %vm1025_vm6, %v1179_v39  ;;  %5651 = vmatmul.mubr.msk.f32.vlgmr.msra.gmra.mxu1 %vm1025_vm6, %v1329_v42 }
 0x251   : > { %5654 = vmatpush3.msra.mxu0 %v6405_v41  ;;  %5659 = vmatpush3.xpose.msk.msra.mxu1 %vm693_vm1, %v6422_v50 }
 0x252   : > { %5655 = vmatprep.mubr.msk.f32.mxu0 %vm6128_vm2, %v6122_v5  ;;  %5660 = vmatprep.mubr.msk.f32.mxu1 %vm6128_vm2, %v6122_v5 }
 0x253   : > { %5663 = vmatprep.subr.mxu0 %v6122_v5  ;;  %5668 = vmatprep.subr.mxu1 %v6122_v5 }
 0x254   : > { %5656 = vmatmul.mubr.msk.f32.vlgmr.msra.gmra.mxu0 %vm1025_vm6, %v1330_v43  ;;  %5661 = vmatmul.mubr.msk.f32.vlgmr.msra.gmra.mxu1 %vm693_vm1, %v6420_v49 }
 0x255   : > { %5664 = vmatpush3.xpose.msk.msra.mxu0 %vm693_vm1, %v6424_v51  ;;  %5669 = vmatpush3.msra.mxu1 %v6443_v58 }
 0x256   : > { %5665 = vmatprep.mubr.msk.f32.mxu0 %vm6128_vm2, %v6122_v5  ;;  %5673 = vmatprep.subr.mxu0 %v6122_v5 }
 0x257   : > { %5670 = vmatprep.mubr.msk.f32.mxu1 %vm6128_vm2, %v6122_v5  ;;  %5678 = vmatprep.subr.mxu1 %v6122_v5 }
 0x258   : > { %5666 = vmatmul.mubr.msk.f32.vlgmr.msra.gmra.mxu0 %vm693_vm1, %v6439_v56 }
 0x259   : > { %5674 = vmatpush3.msra.mxu0 %v6441_v57  ;;  %5675 = vmatprep.mubr.msk.f32.mxu0 %vm6128_vm2, %v6122_v5 }
 0x25a   : > { %5683 = vmatprep.subr.mxu0 %v6122_v5 }
 0x281   : > { %v6531_v41 = vpop.permute.xlu1 %1974  ;;  %v6548_v49 = vpop.permute.xlu0 %2051 }
 0x285   : > { %v6533_v44 = vpop.permute.xlu1 %2447  ;;  %v6550_v52 = vpop.permute.xlu0 %2522 }
 0x289   : > { %v2603_v45 = vpop.permute.xlu1 %2602 }
 0x28a   : > { %v2605_v46 = vmul.f32 %v2603_v45, %v6422_v50  ;;  %v2606_v47 = vmul.f32 %v2603_v45, %v6424_v51 }
 0x28c   : > { %2685 = vrot.lane.b32.xlu1 %v2606_v47, %s6125_s26  ;;  %2608 = vrot.lane.b32.xlu0 %v2605_v46, %s6125_s26 }
 0x290   : > { %3400 = vrot.lane.b32.xlu1 %v6542_v48, %s6125_s26  ;;  %2925 = vrot.lane.b32.xlu0 %v6542_v48, %s6124_s22 }
 0x2fe   : > { %v6552_v53 = vpop.permute.xlu1 %2685  ;;  %v6554_v54 = vpop.permute.xlu0 %2608 }
 0x302   : > { %v2926_v56 = vpop.permute.xlu0 %2925  ;;  %v3401_v59 = vpop.permute.xlu1 %3400 }
 0x303   : > { %v2928_v57 = vmul.f32 %v2926_v56, %v6365_v24  ;;  %v2929_v58 = vmul.f32 %v2926_v56, %v6369_v28  ;;  %v3403_v60 = vmul.f32 %v3401_v59, %v6365_v24  ;;  %v3404_v61 = vmul.f32 %v3401_v59, %v6369_v28 }
 0x305   : > { %3010 = vrot.lane.b32.xlu1 %v2929_v58, %s6124_s22  ;;  %2933 = vrot.lane.b32.xlu0 %v2928_v57, %s6124_s22 }
 0x308   : > { %v1095_v62 = vpop.f32.mrf.mxu1 }
 0x309   : > { %1176 = vst.msk [vmem:[#allocation2] sm:$0xff] %vm693_vm1, %v1095_v62  ;;  %3481 = vrot.lane.b32.xlu1 %v3404_v61, %s7056_s16  ;;  %3406 = vrot.lane.b32.xlu0 %v3403_v60, %s7056_s16 }
 0x30a   : > { %v5632_v63 = vpop.f32.mrf.mxu1 }
 0x30c   : > { %v1172_v0 = vpop.f32.mrf.mxu0  ;;  %v1249_v1 = vpop.f32.mrf.mxu1 }
 0x30d   : > { %1177 = vst.msk [vmem:[#allocation2 + $0x18] sm:$0xff] %vm693_vm1, %v1172_v0  ;;  %1327 = vst.msk [vmem:[#allocation2 + $0x8] sm:$0xff] %vm693_vm1, %v1249_v1  ;;  %3561 = vrot.lane.b32.xlu0 %v6542_v48, %s7056_s16 }
 0x30e   : > { %v5637_v2 = vpop.f32.mrf.mxu0  ;;  %v5642_v3 = vpop.f32.mrf.mxu1 }
 0x310   : > { %v1322_v4 = vpop.f32.mrf.mxu0  ;;  %v1400_v6 = vpop.f32.mrf.mxu1 }
 0x311   : > { %1328 = vst.msk [vmem:[#allocation2 + $0x20] sm:$0xff] %vm693_vm1, %v1322_v4  ;;  %1478 = vst.msk [vmem:[#allocation2 + $0x10] sm:$0xff] %vm693_vm1, %v1400_v6 }
 0x312   : > { %v5647_v8 = vpop.f32.mrf.mxu0  ;;  %v5652_v9 = vpop.f32.mrf.mxu1 }
 0x314   : > { %v1473_v10 = vpop.f32.mrf.mxu0  ;;  %v1559_v11 = vpop.f32.mrf.mxu1 }
 0x315   : > { %1479 = vst.msk [vmem:[#allocation2 + $0x28] sm:$0xff] %vm693_vm1, %v1473_v10  ;;  %v1641_v12 = vmul.f32 0.35355338, %v1559_v11 }
 0x316   : > { %v5657_v13 = vpop.f32.mrf.mxu0  ;;  %v5662_v14 = vpop.f32.mrf.mxu1 }
 0x317   : > { %5978 = vtanh.f32 %v1641_v12 }
 0x318   : > { %v1637_v15 = vpop.f32.mrf.mxu0 }
 0x319   : > { %v1642_v16 = vmul.f32 0.35355338, %v1637_v15 }
 0x31a   : > { %v5667_v17 = vpop.f32.mrf.mxu0 }
 0x31b   : > { %5980 = vtanh.f32 %v1642_v16 }
 0x324   : > { %v5979_v21 = vpop.eup %5978 }
 0x325   : > { %v1645_v22 = vmul.f32 2.8284273, %v5979_v21  ;;  %v2128_v21 = vld [vmem:[#allocation2 + $0x18] sm:$0xff] }
 0x327   : > { %5671 = vmatmul.mubr.msk.f32.vlgmr.msra.gmra.mxu1 %vm1025_vm6, %v1645_v22 }
 0x328   : > { %v5981_v23 = vpop.eup %5980  ;;  %5679 = vmatpush3.xpose.msk.msra.mxu1 %vm693_vm1, %v6389_v37  ;;  %5680 = vmatprep.mubr.msk.f32.mxu1 %vm6128_vm2, %v6122_v5 }
 0x329   : > { %v1646_v25 = vmul.f32 2.8284273, %v5981_v23  ;;  %5688 = vmatprep.subr.mxu1 %v6122_v5  ;;  %v2281_v23 = vld [vmem:[#allocation2 + $0x8] sm:$0xff] }
 0x32b   : > { %5676 = vmatmul.mubr.msk.f32.vlgmr.msra.gmra.mxu0 %vm1025_vm6, %v1646_v25  ;;  %5681 = vmatmul.mubr.msk.f32.vlgmr.msra.gmra.mxu1 %vm693_vm1, %v1813_v19 }
 0x32c   : > { %5684 = vmatpush3.xpose.msk.msra.mxu0 %vm693_vm1, %v6398_v40  ;;  %5689 = vmatpush3.msra.mxu1 %v6531_v41 }
 0x32d   : > { %5685 = vmatprep.mubr.msk.f32.mxu0 %vm6128_vm2, %v6122_v5  ;;  %5693 = vmatprep.subr.mxu0 %v6122_v5 }
 0x32e   : > { %5690 = vmatprep.mubr.msk.f32.mxu1 %vm6128_vm2, %v6122_v5  ;;  %5698 = vmatprep.subr.mxu1 %v6122_v5 }
 0x32f   : > { %5686 = vmatmul.mubr.msk.f32.vlgmr.msra.gmra.mxu0 %vm693_vm1, %v1814_v26 }
 0x330   : > { %5694 = vmatpush3.msra.mxu0 %v6548_v49  ;;  %5695 = vmatprep.mubr.msk.f32.mxu0 %vm6128_vm2, %v6122_v5 }
 0x331   : > { %5703 = vmatprep.subr.mxu0 %v6122_v5 }
 0x377   : > { %v6598_v20 = vpop.permute.xlu0 %2933  ;;  %v6616_v39 = vpop.permute.xlu1 %3010 }
 0x37b   : > { %v6600_v30 = vpop.permute.xlu0 %3406  ;;  %v6619_v57 = vpop.permute.xlu1 %3481 }
 0x37f   : > { %v3562_v31 = vpop.permute.xlu0 %3561 }
 0x380   : > { %v3564_v55 = vmul.f32 %v3562_v31, %v6422_v50  ;;  %v3565_v34 = vmul.f32 %v3562_v31, %v6424_v51 }
 0x382   : > { %3644 = vrot.lane.b32.xlu0 %v3565_v34, %s6125_s26  ;;  %3567 = vrot.lane.b32.xlu1 %v3564_v55, %s6125_s26  ;;  %v2282_v34 = vld [vmem:[#allocation2 + $0x20] sm:$0xff] }
 0x386   : > { %4359 = vrot.lane.b32.xlu0 %v6609_v35, %s6125_s26  ;;  %3884 = vrot.lane.b32.xlu1 %v6609_v35, %s6124_s22 }
 0x3e7   : > { %v1725_v36 = vpop.f32.mrf.mxu1 }
 0x3e8   : > { %1806 = vst.msk [vmem:[#allocation3] sm:$0xff] %vm693_vm1, %v1725_v36 }
 0x3e9   : > { %v5672_v7 = vpop.f32.mrf.mxu1 }
 0x3eb   : > { %v1802_v42 = vpop.f32.mrf.mxu0  ;;  %v1884_v43 = vpop.f32.mrf.mxu1 }
 0x3ec   : > { %1807 = vst.msk [vmem:[#allocation3 + $0x8] sm:$0xff] %vm693_vm1, %v1802_v42  ;;  %v1961_v45 = vmul.f32 0.35355338, %v1884_v43  ;;  %v2435_v42 = vld [vmem:[#allocation2 + $0x10] sm:$0xff] }
 0x3ed   : > { %v5677_v46 = vpop.f32.mrf.mxu0  ;;  %v5682_v47 = vpop.f32.mrf.mxu1 }
 0x3ee   : > { %5982 = vtanh.f32 %v1961_v45 }
 0x3ef   : > { %v1957_v56 = vpop.f32.mrf.mxu0 }
 0x3f0   : > { %v1962_v58 = vmul.f32 0.35355338, %v1957_v56  ;;  %v2436_v56 = vld [vmem:[#allocation2 + $0x28] sm:$0xff] }
 0x3f1   : > { %v5687_v59 = vpop.f32.mrf.mxu0 }
 0x3f2   : > { %5984 = vtanh.f32 %v1962_v58 }
 0x3f4   : > { %v6621_v60 = vpop.permute.xlu0 %3644  ;;  %v6623_v61 = vpop.permute.xlu1 %3567 }
 0x3f8   : > { %v3885_v62 = vpop.permute.xlu1 %3884  ;;  %v4360_v1 = vpop.permute.xlu0 %4359 }
 0x3f9   : > { %v3887_v63 = vmul.f32 %v3885_v62, %v6365_v24  ;;  %v3888_v0 = vmul.f32 %v3885_v62, %v6369_v28  ;;  %v4363_v4 = vmul.f32 %v4360_v1, %v6369_v28  ;;  %v4362_v6 = vmul.f32 %v4360_v1, %v6365_v24 }
 0x3fb   : > { %v5983_v2 = vpop.eup %5982  ;;  %3969 = vrot.lane.b32.xlu0 %v3888_v0, %s6124_s22  ;;  %3892 = vrot.lane.b32.xlu1 %v3887_v63, %s6124_s22  ;;  %s5493_s22 = sshll.u32 %s6249_s0, 8 }
 0x3fc   : > { %v1971_v3 = vmul.f32 %v5983_v2, %v6465_v18  ;;  %v2133_v10 = vmul.f32 %v5983_v2, %v6473_v29  ;;  %v2287_v12 = vmul.f32 %v5983_v2, %v6479_v32 }
 0x3fe   : > { %5691 = vmatmul.mubr.msk.f32.vlgmr.msra.gmra.mxu1 %vm1025_vm6, %v1971_v3 }
 0x3ff   : > { %v5985_v8 = vpop.eup %5984  ;;  %5699 = vmatpush3.msra.mxu1 %v6531_v41  ;;  %4440 = vrot.lane.b32.xlu0 %v4363_v4, %s7056_s16 }
 0x400   : > { %4365 = vrot.lane.b32.xlu1 %v4362_v6, %s7056_s16  ;;  %5700 = vmatprep.mubr.msk.f32.mxu1 %vm6128_vm2, %v6122_v5  ;;  %v1972_v9 = vmul.f32 %v5985_v8, %v6471_v27  ;;  %v2134_v11 = vmul.f32 %v5985_v8, %v6481_v33 }
 0x401   : > { %5708 = vmatprep.subr.mxu1 %v6122_v5 }
 0x402   : > { %5696 = vmatmul.mubr.msk.f32.vlgmr.msra.gmra.mxu0 %vm1025_vm6, %v1972_v9  ;;  %5701 = vmatmul.mubr.msk.f32.vlgmr.msra.gmra.mxu1 %vm1025_vm6, %v2133_v10  ;;  %v2772_v10 = vmul.f32 %v6542_v48, %v6365_v24 }
 0x403   : > { %5704 = vmatpush3.msra.mxu0 %v6548_v49  ;;  %5709 = vmatpush3.msra.mxu1 %v6531_v41  ;;  %v2288_v41 = vmul.f32 %v5985_v8, %v6499_v38 }
 0x404   : > { %4520 = vrot.lane.b32.xlu1 %v6609_v35, %s7056_s16  ;;  %5705 = vmatprep.mubr.msk.f32.mxu0 %vm6128_vm2, %v6122_v5  ;;  %s5240_s16 = sshll.u32 %s639_s25, 4  ;;  %s6967_s16 = int_to_ptr.vmem [resolvable:$true] %s5240_s16 }
 0x405   : > { %5710 = vmatprep.mubr.msk.f32.mxu1 %vm6128_vm2, %v6122_v5  ;;  %5713 = vmatprep.subr.mxu0 %v6122_v5  ;;  %s6055_s0 = scalar_lea.vmem %s6967_s16, 256 }
 0x406   : > { %5718 = vmatprep.subr.mxu1 %v6122_v5  ;;  %5706 = vmatmul.mubr.msk.f32.vlgmr.msra.gmra.mxu0 %vm1025_vm6, %v2134_v11  ;;  %v2773_v11 = vmul.f32 %v6542_v48, %v6369_v28  ;;  %p6056_p10 = scmp.ne.s32.totalorder %s6967_s16, %s6055_s0 }
 0x407   : > { %5711 = vmatmul.mubr.msk.f32.vlgmr.msra.gmra.mxu1 %vm1025_vm6, %v2287_v12  ;;  %5714 = vmatpush3.msra.mxu0 %v6548_v49 }
 0x408   : > { %5719 = vmatpush3.xpose.msk.msra.mxu1 %vm693_vm1, %v6422_v50  ;;  %5715 = vmatprep.mubr.msk.f32.mxu0 %vm6128_vm2, %v6122_v5  ;;  %p6057_p11 = pnand %p6056_p10, %p6266_p5 }
 0x409   : > { %5720 = vmatprep.mubr.msk.f32.mxu1 %vm6128_vm2, %v6122_v5  ;;  %5723 = vmatprep.subr.mxu0 %v6122_v5 }
 0x40a   : > { %5728 = vmatprep.subr.mxu1 %v6122_v5  ;;  %5716 = vmatmul.mubr.msk.f32.vlgmr.msra.gmra.mxu0 %vm1025_vm6, %v2288_v41  ;;  %v2761_v41 = vld [vmem:[#allocation3] sm:$0xff]  ;;  %p6058_p12 = pneg %p6057_p11 }
 0x40b   : > { %5721 = vmatmul.mubr.msk.f32.vlgmr.msra.gmra.mxu1 %vm693_vm1, %v6533_v44  ;;  %5724 = vmatpush3.xpose.msk.msra.mxu0 %vm693_vm1, %v6424_v51 }
 0x40c   : > { %5729 = vmatpush3.msra.mxu1 %v6554_v54  ;;  %5725 = vmatprep.mubr.msk.f32.mxu0 %vm6128_vm2, %v6122_v5 }
 0x40d   : > { %5733 = vmatprep.subr.mxu0 %v6122_v5  ;;  %5730 = vmatprep.mubr.msk.f32.mxu1 %vm6128_vm2, %v6122_v5 }
 0x40e   : > { %5726 = vmatmul.mubr.msk.f32.vlgmr.msra.gmra.mxu0 %vm693_vm1, %v6550_v52  ;;  %5738 = vmatprep.subr.mxu1 %v6122_v5 }
 0x40f   : > { %5734 = vmatpush3.msra.mxu0 %v6552_v53  ;;  %5735 = vmatprep.mubr.msk.f32.mxu0 %vm6128_vm2, %v6122_v5  ;;  %v2127_v53 = vld [vmem:[#allocation2] sm:$0xff] }
 0x410   : > { %5743 = vmatprep.subr.mxu0 %v6122_v5 }
 0x46d   : > { %v6685_v44 = vpop.permute.xlu1 %3892 }
 0x472   : > { %v6687_v49 = vpop.permute.xlu1 %4365 }
 0x476   : > { %v4521_v54 = vpop.permute.xlu1 %4520 }
 0x477   : > { %v4523_v13 = vmul.f32 %v4521_v54, %v6422_v50  ;;  %v4524_v14 = vmul.f32 %v4521_v54, %v6424_v51 }
 0x479   : > { %4603 = vrot.lane.b32.xlu1 %v4524_v14, %s6125_s26  ;;  %4526 = vrot.lane.b32.xlu0 %v4523_v13, %s6125_s26  ;;  %v2762_v14 = vld [vmem:[#allocation3 + $0x8] sm:$0xff] }
 0x4be   : > { %v2046_v52 = vpop.f32.mrf.mxu1 }
 0x4bf   : > { %v2129_v15 = vadd.f32 %v2127_v53, %v2046_v52 }
 0x4c0   : > { %v5692_v16 = vpop.f32.mrf.mxu1 }
 0x4c1   : > { %2131 = vst.msk [vmem:[#allocation2] sm:$0xff] %vm693_vm1, %v2129_v15 }
 0x4c2   : > { %v2123_v17 = vpop.f32.mrf.mxu0  ;;  %v2204_v22 = vpop.f32.mrf.mxu1 }
 0x4c3   : > { %v2130_v25 = vadd.f32 %v2128_v21, %v2123_v17  ;;  %v2283_v19 = vadd.f32 %v2281_v23, %v2204_v22 }
 0x4c4   : > { %v5697_v26 = vpop.f32.mrf.mxu0  ;;  %v5702_v31 = vpop.f32.mrf.mxu1 }
 0x4c5   : > { %2132 = vst.msk [vmem:[#allocation2 + $0x18] sm:$0xff] %vm693_vm1, %v2130_v25  ;;  %2285 = vst.msk [vmem:[#allocation2 + $0x8] sm:$0xff] %vm693_vm1, %v2283_v19 }
 0x4c6   : > { %v2277_v55 = vpop.f32.mrf.mxu0 }
 0x4c7   : > { %v2284_v36 = vadd.f32 %v2282_v34, %v2277_v55  ;;  %v2358_v7 = vpop.f32.mrf.mxu1 }
 0x4c8   : > { %v2437_v43 = vadd.f32 %v2435_v42, %v2358_v7  ;;  %v5707_v45 = vpop.f32.mrf.mxu0 }
 0x4c9   : > { %2286 = vst.msk [vmem:[#allocation2 + $0x20] sm:$0xff] %vm693_vm1, %v2284_v36  ;;  %v5712_v46 = vpop.f32.mrf.mxu1 }
 0x4ca   : > { %2439 = vst.msk [vmem:[#allocation2 + $0x10] sm:$0xff] %vm693_vm1, %v2437_v43  ;;  %v2431_v47 = vpop.f32.mrf.mxu0 }
 0x4cb   : > { %v2438_v58 = vadd.f32 %v2436_v56, %v2431_v47  ;;  %v2517_v59 = vpop.f32.mrf.mxu1 }
 0x4cc   : > { %v2596_v62 = vmul.f32 0.35355338, %v2517_v59  ;;  %v5717_v63 = vpop.f32.mrf.mxu0  ;;  %v3087_v43 = vld [vmem:[#allocation2 + $0x18] sm:$0xff] }
 0x4cd   : > { %2440 = vst.msk [vmem:[#allocation2 + $0x28] sm:$0xff] %vm693_vm1, %v2438_v58  ;;  %v5722_v0 = vpop.f32.mrf.mxu1 }
 0x4ce   : > { %5986 = vtanh.f32 %v2596_v62  ;;  %v2592_v1 = vpop.f32.mrf.mxu0 }
 0x4cf   : > { %v2597_v2 = vmul.f32 0.35355338, %v2592_v1 }
 0x4d0   : > { %v5727_v3 = vpop.f32.mrf.mxu0  ;;  %v3241_v59 = vld [vmem:[#allocation2 + $0x20] sm:$0xff] }
 0x4d1   : > { %5988 = vtanh.f32 %v2597_v2  ;;  %v3394_v0 = vld [vmem:[#allocation2 + $0x10] sm:$0xff] }
 0x4db   : > { %v5987_v4 = vpop.eup %5986 }
 0x4dc   : > { %v2600_v6 = vmul.f32 2.8284273, %v5987_v4 }
 0x4de   : > { %v5989_v8 = vpop.eup %5988  ;;  %5731 = vmatmul.mubr.msk.f32.vlgmr.msra.gmra.mxu1 %vm1025_vm6, %v2600_v6  ;;  %v3395_v6 = vld [vmem:[#allocation2 + $0x28] sm:$0xff] }
 0x4df   : > { %v2601_v9 = vmul.f32 2.8284273, %v5989_v8  ;;  %5739 = vmatpush3.xpose.msk.msra.mxu1 %vm693_vm1, %v6389_v37  ;;  %5740 = vmatprep.mubr.msk.f32.mxu1 %vm6128_vm2, %v6122_v5 }
 0x4e0   : > { %5748 = vmatprep.subr.mxu1 %v6122_v5 }
 0x4e1   : > { %5736 = vmatmul.mubr.msk.f32.vlgmr.msra.gmra.mxu0 %vm1025_vm6, %v2601_v9 }
 0x4e2   : > { %5741 = vmatmul.mubr.msk.f32.vlgmr.msra.gmra.mxu1 %vm693_vm1, %v2772_v10  ;;  %5744 = vmatpush3.xpose.msk.msra.mxu0 %vm693_vm1, %v6398_v40 }
 0x4e3   : > { %5749 = vmatpush3.msra.mxu1 %v6598_v20  ;;  %5745 = vmatprep.mubr.msk.f32.mxu0 %vm6128_vm2, %v6122_v5 }
 0x4e4   : > { %5753 = vmatprep.subr.mxu0 %v6122_v5  ;;  %5750 = vmatprep.mubr.msk.f32.mxu1 %vm6128_vm2, %v6122_v5 }
 0x4e5   : > { %5746 = vmatmul.mubr.msk.f32.vlgmr.msra.gmra.mxu0 %vm693_vm1, %v2773_v11  ;;  %5758 = vmatprep.subr.mxu1 %v6122_v5 }
 0x4e6   : > { %5754 = vmatpush3.msra.mxu0 %v6616_v39  ;;  %5755 = vmatprep.mubr.msk.f32.mxu0 %vm6128_vm2, %v6122_v5 }
 0x4e7   : > { %5763 = vmatprep.subr.mxu0 %v6122_v5 }
 0x59e   : > { %v2680_v12 = vpop.f32.mrf.mxu1 }
 0x59f   : > { %v2763_v54 = vadd.f32 %v2761_v41, %v2680_v12 }
 0x5a0   : > { %v5732_v48 = vpop.f32.mrf.mxu1 }
 0x5a1   : > { %2765 = vst.msk [vmem:[#allocation3] sm:$0xff] %vm693_vm1, %v2763_v54  ;;  %v2757_v13 = vpop.f32.mrf.mxu0 }
 0x5a2   : > { %v2764_v52 = vadd.f32 %v2762_v14, %v2757_v13  ;;  %v2843_v53 = vpop.f32.mrf.mxu1 }
 0x5a3   : > { %v2920_v15 = vmul.f32 0.35355338, %v2843_v53  ;;  %v5737_v16 = vpop.f32.mrf.mxu0 }
 0x5a4   : > { %2766 = vst.msk [vmem:[#allocation3 + $0x8] sm:$0xff] %vm693_vm1, %v2764_v52  ;;  %v5742_v17 = vpop.f32.mrf.mxu1 }
 0x5a5   : > { %5990 = vtanh.f32 %v2920_v15  ;;  %v2916_v21 = vpop.f32.mrf.mxu0  ;;  %v3731_v15 = vmul.f32 %v6609_v35, %v6365_v24  ;;  %v3970_v24 = vpop.permute.xlu0 %3969 }
 0x5a6   : > { %v2921_v22 = vmul.f32 0.35355338, %v2916_v21 }
 0x5a7   : > { %v5747_v23 = vpop.f32.mrf.mxu0 }
 0x5a8   : > { %5992 = vtanh.f32 %v2921_v22  ;;  %v3720_v16 = vld [vmem:[#allocation3] sm:$0xff] }
 0x5ab   : > { %v3721_v21 = vld [vmem:[#allocation3 + $0x8] sm:$0xff] }
 0x5b2   : > { %v5991_v25 = vpop.eup %5990 }
 0x5b3   : > { %v2930_v19 = vmul.f32 %v5991_v25, %v6465_v18  ;;  %v3092_v55 = vmul.f32 %v5991_v25, %v6473_v29  ;;  %v3246_v36 = vmul.f32 %v5991_v25, %v6479_v32 }
 0x5b5   : > { %v5993_v26 = vpop.eup %5992  ;;  %5751 = vmatmul.mubr.msk.f32.vlgmr.msra.gmra.mxu1 %vm1025_vm6, %v2930_v19 }
 0x5b6   : > { %5759 = vmatpush3.msra.mxu1 %v6598_v20  ;;  %5760 = vmatprep.mubr.msk.f32.mxu1 %vm6128_vm2, %v6122_v5  ;;  %v2931_v31 = vmul.f32 %v5993_v26, %v6471_v27  ;;  %v3093_v34 = vmul.f32 %v5993_v26, %v6481_v33 }
 0x5b7   : > { %5768 = vmatprep.subr.mxu1 %v6122_v5 }
 0x5b8   : > { %5756 = vmatmul.mubr.msk.f32.vlgmr.msra.gmra.mxu0 %vm1025_vm6, %v2931_v31 }
 0x5b9   : > { %5761 = vmatmul.mubr.msk.f32.vlgmr.msra.gmra.mxu1 %vm1025_vm6, %v3092_v55  ;;  %5764 = vmatpush3.msra.mxu0 %v6616_v39 }
 0x5ba   : > { %5769 = vmatpush3.msra.mxu1 %v6598_v20  ;;  %5765 = vmatprep.mubr.msk.f32.mxu0 %vm6128_vm2, %v6122_v5  ;;  %v3247_v20 = vmul.f32 %v5993_v26, %v6499_v38 }
 0x5bb   : > { %5770 = vmatprep.mubr.msk.f32.mxu1 %vm6128_vm2, %v6122_v5  ;;  %5773 = vmatprep.subr.mxu0 %v6122_v5 }
 0x5bc   : > { %5778 = vmatprep.subr.mxu1 %v6122_v5  ;;  %5766 = vmatmul.mubr.msk.f32.vlgmr.msra.gmra.mxu0 %vm1025_vm6, %v3093_v34 }
 0x5bd   : > { %5771 = vmatmul.mubr.msk.f32.vlgmr.msra.gmra.mxu1 %vm1025_vm6, %v3246_v36  ;;  %5774 = vmatpush3.msra.mxu0 %v6616_v39  ;;  %v3086_v39 = vld [vmem:[#allocation2] sm:$0xff] }
 0x5be   : > { %5779 = vmatpush3.xpose.msk.msra.mxu1 %vm693_vm1, %v6422_v50  ;;  %5775 = vmatprep.mubr.msk.f32.mxu0 %vm6128_vm2, %v6122_v5 }
 0x5bf   : > { %5780 = vmatprep.mubr.msk.f32.mxu1 %vm6128_vm2, %v6122_v5  ;;  %5783 = vmatprep.subr.mxu0 %v6122_v5 }
 0x5c0   : > { %5788 = vmatprep.subr.mxu1 %v6122_v5  ;;  %5776 = vmatmul.mubr.msk.f32.vlgmr.msra.gmra.mxu0 %vm1025_vm6, %v3247_v20 }
 0x5c1   : > { %5781 = vmatmul.mubr.msk.f32.vlgmr.msra.gmra.mxu1 %vm693_vm1, %v6600_v30  ;;  %5784 = vmatpush3.xpose.msk.msra.mxu0 %vm693_vm1, %v6424_v51 }
 0x5c2   : > { %5789 = vmatpush3.msra.mxu1 %v6623_v61  ;;  %5785 = vmatprep.mubr.msk.f32.mxu0 %vm6128_vm2, %v6122_v5 }
 0x5c3   : > { %5793 = vmatprep.subr.mxu0 %v6122_v5  ;;  %5790 = vmatprep.mubr.msk.f32.mxu1 %vm6128_vm2, %v6122_v5 }
 0x5c4   : > { %5786 = vmatmul.mubr.msk.f32.vlgmr.msra.gmra.mxu0 %vm693_vm1, %v6619_v57  ;;  %5798 = vmatprep.subr.mxu1 %v6122_v5  ;;  %v3240_v57 = vld [vmem:[#allocation2 + $0x8] sm:$0xff] }
 0x5c5   : > { %5794 = vmatpush3.msra.mxu0 %v6621_v60  ;;  %5795 = vmatprep.mubr.msk.f32.mxu0 %vm6128_vm2, %v6122_v5 }
 0x5c6   : > { %5803 = vmatprep.subr.mxu0 %v6122_v5 }
 0x675   : > { %v3005_v30 = vpop.f32.mrf.mxu1 }
 0x676   : > { %v3088_v61 = vadd.f32 %v3086_v39, %v3005_v30 }
 0x677   : > { %v5752_v7 = vpop.f32.mrf.mxu1 }
 0x678   : > { %3090 = vst.msk [vmem:[#allocation2] sm:$0xff] %vm693_vm1, %v3088_v61  ;;  %v3082_v42 = vpop.f32.mrf.mxu0 }
 0x679   : > { %v3089_v45 = vadd.f32 %v3087_v43, %v3082_v42  ;;  %v3163_v46 = vpop.f32.mrf.mxu1 }
 0x67a   : > { %v3242_v47 = vadd.f32 %v3240_v57, %v3163_v46  ;;  %v5757_v56 = vpop.f32.mrf.mxu0 }
 0x67b   : > { %3091 = vst.msk [vmem:[#allocation2 + $0x18] sm:$0xff] %vm693_vm1, %v3089_v45  ;;  %v5762_v60 = vpop.f32.mrf.mxu1 }
 0x67c   : > { %3244 = vst.msk [vmem:[#allocation2 + $0x8] sm:$0xff] %vm693_vm1, %v3242_v47  ;;  %v3236_v58 = vpop.f32.mrf.mxu0 }
 0x67d   : > { %v3243_v62 = vadd.f32 %v3241_v59, %v3236_v58  ;;  %v3317_v63 = vpop.f32.mrf.mxu1 }
 0x67e   : > { %v3396_v1 = vadd.f32 %v3394_v0, %v3317_v63  ;;  %v5767_v2 = vpop.f32.mrf.mxu0 }
 0x67f   : > { %3245 = vst.msk [vmem:[#allocation2 + $0x20] sm:$0xff] %vm693_vm1, %v3243_v62  ;;  %v5772_v3 = vpop.f32.mrf.mxu1 }
 0x680   : > { %3398 = vst.msk [vmem:[#allocation2 + $0x10] sm:$0xff] %vm693_vm1, %v3396_v1  ;;  %v3390_v4 = vpop.f32.mrf.mxu0 }
 0x681   : > { %v3397_v8 = vadd.f32 %v3395_v6, %v3390_v4  ;;  %v3476_v9 = vpop.f32.mrf.mxu1 }
 0x682   : > { %v3555_v10 = vmul.f32 0.35355338, %v3476_v9  ;;  %v5777_v11 = vpop.f32.mrf.mxu0  ;;  %v4046_v43 = vld [vmem:[#allocation2 + $0x18] sm:$0xff] }
 0x683   : > { %3399 = vst.msk [vmem:[#allocation2 + $0x28] sm:$0xff] %vm693_vm1, %v3397_v8  ;;  %v5782_v12 = vpop.f32.mrf.mxu1  ;;  %v4199_v57 = vld [vmem:[#allocation2 + $0x8] sm:$0xff] }
 0x684   : > { %5994 = vtanh.f32 %v3555_v10  ;;  %v3551_v41 = vpop.f32.mrf.mxu0 }
 0x685   : > { %v3556_v54 = vmul.f32 0.35355338, %v3551_v41 }
 0x686   : > { %v5787_v48 = vpop.f32.mrf.mxu0  ;;  %v4200_v58 = vld [vmem:[#allocation2 + $0x20] sm:$0xff] }
 0x687   : > { %5996 = vtanh.f32 %v3556_v54  ;;  %v4353_v63 = vld [vmem:[#allocation2 + $0x10] sm:$0xff] }
 0x68a   : > { %v4354_v4 = vld [vmem:[#allocation2 + $0x28] sm:$0xff] }
 0x691   : > { %v5995_v13 = vpop.eup %5994 }
 0x692   : > { %v3559_v14 = vmul.f32 2.8284273, %v5995_v13 }
 0x694   : > { %v5997_v52 = vpop.eup %5996  ;;  %5791 = vmatmul.mubr.msk.f32.vlgmr.msra.gmra.mxu1 %vm1025_vm6, %v3559_v14  ;;  %v4693_v14 = vld [vmem:[%s7023_s7 + $0x10] sm:$0xff] }
 0x695   : > { %v3560_v53 = vmul.f32 2.8284273, %v5997_v52  ;;  %5799 = vmatpush3.xpose.msk.msra.mxu1 %vm693_vm1, %v6389_v37  ;;  %5800 = vmatprep.mubr.msk.f32.mxu1 %vm6128_vm2, %v6122_v5  ;;  %v3732_v37 = vmul.f32 %v6609_v35, %v6369_v28 }
 0x696   : > { %5808 = vmatprep.subr.mxu1 %v6122_v5 }
 0x697   : > { %5796 = vmatmul.mubr.msk.f32.vlgmr.msra.gmra.mxu0 %vm1025_vm6, %v3560_v53 }
 0x698   : > { %5801 = vmatmul.mubr.msk.f32.vlgmr.msra.gmra.mxu1 %vm693_vm1, %v3731_v15  ;;  %5804 = vmatpush3.xpose.msk.msra.mxu0 %vm693_vm1, %v6398_v40 }
 0x699   : > { %5809 = vmatpush3.msra.mxu1 %v6685_v44  ;;  %5805 = vmatprep.mubr.msk.f32.mxu0 %vm6128_vm2, %v6122_v5 }
 0x69a   : > { %5813 = vmatprep.subr.mxu0 %v6122_v5  ;;  %5810 = vmatprep.mubr.msk.f32.mxu1 %vm6128_vm2, %v6122_v5 }
 0x69b   : > { %5806 = vmatmul.mubr.msk.f32.vlgmr.msra.gmra.mxu0 %vm693_vm1, %v3732_v37  ;;  %5818 = vmatprep.subr.mxu1 %v6122_v5  ;;  %v4692_v37 = vld [vmem:[%s7023_s7 + $0x8] sm:$0xff] }
 0x69c   : > { %5814 = vmatpush3.msra.mxu0 %v3970_v24  ;;  %5815 = vmatprep.mubr.msk.f32.mxu0 %vm6128_vm2, %v6122_v5 }
 0x69d   : > { %5823 = vmatprep.subr.mxu0 %v6122_v5 }
 0x754   : > { %v3639_v40 = vpop.f32.mrf.mxu1 }
 0x755   : > { %v3722_v17 = vadd.f32 %v3720_v16, %v3639_v40 }
 0x756   : > { %v5792_v28 = vpop.f32.mrf.mxu1 }
 0x757   : > { %3724 = vst.msk [vmem:[#allocation3] sm:$0xff] %vm693_vm1, %v3722_v17  ;;  %v3716_v35 = vpop.f32.mrf.mxu0 }
 0x758   : > { %v3723_v22 = vadd.f32 %v3721_v21, %v3716_v35  ;;  %v3802_v23 = vpop.f32.mrf.mxu1  ;;  %v4911_v21 = vld [vmem:[%s7027_s11 + $0x18] sm:$0xff] }
 0x759   : > { %v3879_v25 = vmul.f32 0.35355338, %v3802_v23  ;;  %v5797_v19 = vpop.f32.mrf.mxu0  ;;  %v4909_v23 = vld [vmem:[%s7027_s11 + $0x8] sm:$0xff] }
 0x75a   : > { %3725 = vst.msk [vmem:[#allocation3 + $0x8] sm:$0xff] %vm693_vm1, %v3723_v22  ;;  %v5802_v26 = vpop.f32.mrf.mxu1  ;;  %v4910_v22 = vld [vmem:[%s7027_s11 + $0x10] sm:$0xff]  ;;  %v4907_v19 = vld [vmem:[%s7026_s10 + $0x18] sm:$0xff] }
 0x75b   : > { %5998 = vtanh.f32 %v3879_v25  ;;  %v3875_v31 = vpop.f32.mrf.mxu0  ;;  %v4908_v25 = vld [vmem:[%s7027_s11] sm:$0xff] }
 0x75c   : > { %v3880_v55 = vmul.f32 0.35355338, %v3875_v31 }
 0x75d   : > { %v5807_v34 = vpop.f32.mrf.mxu0 }
 0x75e   : > { %6000 = vtanh.f32 %v3880_v55  ;;  %v4679_v31 = vld [vmem:[#allocation3] sm:$0xff] }
 0x768   : > { %v5999_v36 = vpop.eup %5998 }
 0x769   : > { %v3889_v20 = vmul.f32 %v5999_v36, %v6465_v18  ;;  %v4051_v61 = vmul.f32 %v5999_v36, %v6473_v29  ;;  %v4441_v29 = vpop.permute.xlu0 %4440 }
 0x76b   : > { %v6001_v30 = vpop.eup %6000  ;;  %5811 = vmatmul.mubr.msk.f32.vlgmr.msra.gmra.mxu1 %vm1025_vm6, %v3889_v20  ;;  %v4680_v20 = vld [vmem:[#allocation3 + $0x8] sm:$0xff] }
 0x76c   : > { %5819 = vmatpush3.msra.mxu1 %v6685_v44  ;;  %5820 = vmatprep.mubr.msk.f32.mxu1 %vm6128_vm2, %v6122_v5  ;;  %v3890_v39 = vmul.f32 %v6001_v30, %v6471_v27  ;;  %v4052_v18 = vmul.f32 %v6001_v30, %v6481_v33  ;;  %v4205_v27 = vmul.f32 %v5999_v36, %v6479_v32 }
 0x76d   : > { %5828 = vmatprep.subr.mxu1 %v6122_v5  ;;  %v4206_v33 = vmul.f32 %v6001_v30, %v6499_v38  ;;  %v4527_v32 = vpop.permute.xlu0 %4526 }
 0x76e   : > { %5816 = vmatmul.mubr.msk.f32.vlgmr.msra.gmra.mxu0 %vm1025_vm6, %v3890_v39 }
 0x76f   : > { %5821 = vmatmul.mubr.msk.f32.vlgmr.msra.gmra.mxu1 %vm1025_vm6, %v4051_v61  ;;  %5824 = vmatpush3.msra.mxu0 %v3970_v24 }
 0x770   : > { %5829 = vmatpush3.msra.mxu1 %v6685_v44  ;;  %5825 = vmatprep.mubr.msk.f32.mxu0 %vm6128_vm2, %v6122_v5  ;;  %v4045_v44 = vld [vmem:[#allocation2] sm:$0xff] }
 0x771   : > { %5830 = vmatprep.mubr.msk.f32.mxu1 %vm6128_vm2, %v6122_v5  ;;  %5833 = vmatprep.subr.mxu0 %v6122_v5 }
 0x772   : > { %5838 = vmatprep.subr.mxu1 %v6122_v5  ;;  %5826 = vmatmul.mubr.msk.f32.vlgmr.msra.gmra.mxu0 %vm1025_vm6, %v4052_v18 }
 0x773   : > { %5831 = vmatmul.mubr.msk.f32.vlgmr.msra.gmra.mxu1 %vm1025_vm6, %v4205_v27  ;;  %5834 = vmatpush3.msra.mxu0 %v3970_v24  ;;  %v4691_v24 = vld [vmem:[%s7023_s7] sm:$0xff]  ;;  %v4906_v27 = vld [vmem:[%s7026_s10 + $0x10] sm:$0xff] }
 0x774   : > { %5839 = vmatpush3.xpose.msk.msra.mxu1 %vm693_vm1, %v6422_v50  ;;  %5835 = vmatprep.mubr.msk.f32.mxu0 %vm6128_vm2, %v6122_v5  ;;  %v4604_v50 = vpop.permute.xlu1 %4603 }
 0x775   : > { %5840 = vmatprep.mubr.msk.f32.mxu1 %vm6128_vm2, %v6122_v5  ;;  %5843 = vmatprep.subr.mxu0 %v6122_v5 }
 0x776   : > { %5848 = vmatprep.subr.mxu1 %v6122_v5  ;;  %5836 = vmatmul.mubr.msk.f32.vlgmr.msra.gmra.mxu0 %vm1025_vm6, %v4206_v33  ;;  %v6038_v33 = vld [vmem:[%s6336_s29] sm:$0xff] }
 0x777   : > { %5841 = vmatmul.mubr.msk.f32.vlgmr.msra.gmra.mxu1 %vm693_vm1, %v6687_v49  ;;  %5844 = vmatpush3.xpose.msk.msra.mxu0 %vm693_vm1, %v6424_v51  ;;  %v4694_v51 = vld [vmem:[%s7023_s7 + $0x18] sm:$0xff] }
 0x778   : > { %5849 = vmatpush3.msra.mxu1 %v4527_v32  ;;  %5845 = vmatprep.mubr.msk.f32.mxu0 %vm6128_vm2, %v6122_v5  ;;  %v4904_v32 = vld [vmem:[%s7026_s10] sm:$0xff] }
 0x779   : > { %5853 = vmatprep.subr.mxu0 %v6122_v5  ;;  %5850 = vmatprep.mubr.msk.f32.mxu1 %vm6128_vm2, %v6122_v5 }
 0x77a   : > { %5846 = vmatmul.mubr.msk.f32.vlgmr.msra.gmra.mxu0 %vm693_vm1, %v4441_v29  ;;  %5858 = vmatprep.subr.mxu1 %v4694_v51  ;;  %v4905_v29 = vld [vmem:[%s7026_s10 + $0x8] sm:$0xff] }
 0x77b   : > { %5854 = vmatpush3.msra.mxu0 %v4604_v50  ;;  %5855 = vmatprep.mubr.msk.f32.mxu0 %vm6128_vm2, %v6122_v5  ;;  %v6039_v50 = vld [vmem:[%s6336_s29 + $0x8] sm:$0xff]  ;;  %s4888_s29 = sld [smem:[#allocation4]] }
 0x77c   : > { %5875 = vmatprep.subr.mxu0 %v4911_v21 }
 0x82b   : > { %v3964_v38 = vpop.f32.mrf.mxu1 }
 0x82c   : > { %v4047_v49 = vadd.f32 %v4045_v44, %v3964_v38  ;;  %v5112_v38 = vld [vmem:[%s7030_s14 + $0x10] sm:$0xff]  ;;  %v5111_v44 = vld [vmem:[%s7030_s14 + $0x8] sm:$0xff] }
 0x82d   : > { %v5812_v7 = vpop.f32.mrf.mxu1 }
 0x82e   : > { %4049 = vst.msk [vmem:[#allocation2] sm:$0xff] %vm693_vm1, %v4047_v49  ;;  %v4041_v42 = vpop.f32.mrf.mxu0 }
 0x82f   : > { %v4048_v45 = vadd.f32 %v4046_v43, %v4041_v42  ;;  %v4122_v46 = vpop.f32.mrf.mxu1  ;;  %v5480_v43 = vld [vmem:[%s7028_s12] ss:$0 sm:$0xff] }
 0x830   : > { %v4201_v47 = vadd.f32 %v4199_v57, %v4122_v46  ;;  %v5817_v56 = vpop.f32.mrf.mxu0 }
 0x831   : > { %4050 = vst.msk [vmem:[#allocation2 + $0x18] sm:$0xff] %vm693_vm1, %v4048_v45  ;;  %v5822_v5 = vpop.f32.mrf.mxu1 }
 0x832   : > { %4203 = vst.msk [vmem:[#allocation2 + $0x8] sm:$0xff] %vm693_vm1, %v4201_v47  ;;  %v4195_v60 = vpop.f32.mrf.mxu0 }
 0x833   : > { %v4202_v59 = vadd.f32 %v4200_v58, %v4195_v60  ;;  %v4276_v62 = vpop.f32.mrf.mxu1 }
 0x834   : > { %v4355_v0 = vadd.f32 %v4353_v63, %v4276_v62  ;;  %v5827_v1 = vpop.f32.mrf.mxu0 }
 0x835   : > { %4204 = vst.msk [vmem:[#allocation2 + $0x20] sm:$0xff] %vm693_vm1, %v4202_v59  ;;  %v5832_v2 = vpop.f32.mrf.mxu1  ;;  %v4685_v53 = vld [vmem:[#allocation2] sm:$0xff] }
 0x836   : > { %4357 = vst.msk [vmem:[#allocation2 + $0x10] sm:$0xff] %vm693_vm1, %v4355_v0  ;;  %v4349_v3 = vpop.f32.mrf.mxu0  ;;  %v5462_v0 = vld [vmem:[%s7024_s8] ss:$0 sm:$0xff] }
 0x837   : > { %v4356_v6 = vadd.f32 %v4354_v4, %v4349_v3  ;;  %v4435_v8 = vpop.f32.mrf.mxu1 }
 0x838   : > { %v4514_v9 = vmul.f32 0.35355338, %v4435_v8  ;;  %v5837_v10 = vpop.f32.mrf.mxu0  ;;  %v4688_v17 = vld [vmem:[#allocation2 + $0x18] sm:$0xff] }
 0x839   : > { %4358 = vst.msk [vmem:[#allocation2 + $0x28] sm:$0xff] %vm693_vm1, %v4356_v6  ;;  %v5842_v11 = vpop.f32.mrf.mxu1  ;;  %v4686_v40 = vld [vmem:[#allocation2 + $0x8] sm:$0xff] }
 0x83a   : > { %6002 = vtanh.f32 %v4514_v9  ;;  %v4510_v12 = vpop.f32.mrf.mxu0 }
 0x83b   : > { %v4515_v41 = vmul.f32 0.35355338, %v4510_v12 }
 0x83c   : > { %v5847_v54 = vpop.f32.mrf.mxu0  ;;  %v4689_v28 = vld [vmem:[#allocation2 + $0x20] sm:$0xff] }
 0x83d   : > { %6004 = vtanh.f32 %v4515_v41  ;;  %v4687_v16 = vld [vmem:[#allocation2 + $0x10] sm:$0xff]  ;;  %v5110_v41 = vld [vmem:[%s7030_s14] sm:$0xff] }
 0x840   : > { %v4690_v35 = vld [vmem:[#allocation2 + $0x28] sm:$0xff] }
 0x847   : > { %v6003_v48 = vpop.eup %6002 }
 0x848   : > { %v4518_v13 = vmul.f32 2.8284273, %v6003_v48 }
 0x84a   : > { %v6005_v52 = vpop.eup %6004  ;;  %5851 = vmatmul.mubr.msk.f32.vlgmr.msra.gmra.mxu1 %vm1025_vm6, %v4518_v13 }
 0x84b   : > { %v4519_v15 = vmul.f32 2.8284273, %v6005_v52  ;;  %5859 = vmatpush3.msra.mxu1 %v4694_v51  ;;  %5866 = vmatprep.mubr.msk.f32.mxu1 %vm693_vm1, %v4685_v53  ;;  %v5113_v51 = vld [vmem:[%s7030_s14 + $0x18] sm:$0xff] }
 0x84c   : > { %5860 = vmatprep.subr.mxu1 %v4693_v14 }
 0x84d   : > { %5861 = vmatpush3.msra.mxu1 %v4693_v14  ;;  %5856 = vmatmul.mubr.msk.f32.vlgmr.msra.gmra.mxu0 %vm1025_vm6, %v4519_v15 }
 0x84e   : > { %5862 = vmatprep.subr.mxu1 %v4692_v37  ;;  %5876 = vmatpush3.msra.mxu0 %v4911_v21 }
 0x84f   : > { %5863 = vmatpush3.msra.mxu1 %v4692_v37  ;;  %5877 = vmatprep.subr.mxu0 %v4910_v22 }
 0x850   : > { %5864 = vmatprep.subr.mxu1 %v4691_v24  ;;  %5878 = vmatpush3.msra.mxu0 %v4910_v22 }
 0x851   : > { %5865 = vmatpush3.msra.mxu1 %v4691_v24  ;;  %5879 = vmatprep.subr.mxu0 %v4909_v23 }
 0x852   : > { %5867 = vmatmul.mubr.msk.f32.vlgmr.msra.gmra.mxu1 %vm693_vm1, %v4686_v40  ;;  %5880 = vmatpush3.msra.mxu0 %v4909_v23 }
 0x853   : > { %5869 = vmatprep.mubr.msk.f32.mxu1 %vm693_vm1, %v4687_v16  ;;  %5881 = vmatprep.subr.mxu0 %v4908_v25 }
 0x854   : > { %5882 = vmatpush3.msra.mxu0 %v4908_v25  ;;  %5897 = vmatprep.subr.mxu1 %v5113_v51 }
 0x855   : > { %5886 = vmatprep.subr.mxu0 %v4907_v19  ;;  %5898 = vmatpush3.msra.mxu1 %v5113_v51 }
 0x856   : > { %5870 = vmatmul.mubr.msk.f32.gmra.mxu1 %vm693_vm1, %v4688_v17  ;;  %5899 = vmatprep.subr.mxu1 %v5112_v38 }
 0x857   : > { %5872 = vmatprep.mubr.msk.f32.mxu1 %vm693_vm1, %v4689_v28  ;;  %5900 = vmatpush3.msra.mxu1 %v5112_v38 }
 0x858   : > { %5901 = vmatprep.subr.mxu1 %v5111_v44 }
 0x859   : > { %5902 = vmatpush3.msra.mxu1 %v5111_v44 }
 0x85a   : > { %5873 = vmatmul.mubr.msk.f32.gmra.mxu1 %vm693_vm1, %v4690_v35  ;;  %5903 = vmatprep.subr.mxu1 %v5110_v41 }
 0x85b   : > { %5904 = vmatpush3.msra.mxu1 %v5110_v41 }
 0x90a   : > { %v4598_v26 = vpop.f32.mrf.mxu1 }
 0x90b   : > { %v4681_v55 = vadd.f32 %v4679_v31, %v4598_v26 }
 0x90c   : > { %v5852_v34 = vpop.f32.mrf.mxu1 }
 0x90d   : > { %4683 = vst.msk [vmem:[#allocation3] sm:$0xff] %vm693_vm1, %v4681_v55  ;;  %v4675_v36 = vpop.f32.mrf.mxu0 }
 0x90e   : > { %v4682_v30 = vadd.f32 %v4680_v20, %v4675_v36 }
 0x90f   : > { %v5857_v39 = vpop.f32.mrf.mxu0 }
 0x910   : > { %4684 = vst.msk [vmem:[#allocation3 + $0x8] sm:$0xff] %vm693_vm1, %v4682_v30 }
 0x912   : > { %v5868_v57 = vpop.f32.mrf.mxu1 }
 0x913   : > { %v4792_v8 = vadd.f32 %v5868_v57, %v5462_v0 }
 0x914   : > { %v4902_v61 = vld [vmem:[#allocation3] sm:$0xff]  ;;  %v4786_v58 = vpop.f32.mrf.mxu1 }
 0x915   : > { %5883 = vmatprep.mubr.msk.f32.mxu0 %vm693_vm1, %v4902_v61  ;;  %v4787_v1 = vadd.f32 %v5462_v0, %v4786_v58  ;;  %v5470_v54 = vmul.f32 -1.442695, %v4792_v8 }
 0x916   : > { %v5871_v62 = vpop.f32.mrf.mxu1 }
 0x917   : > { %v4903_v18 = vld [vmem:[#allocation3 + $0x8] sm:$0xff]  ;;  %v5469_v9 = vmul.f32 -1.442695, %v4787_v1  ;;  %v4802_v13 = vadd.f32 %v5871_v62, %v5462_v0 }
 0x918   : > { %5884 = vmatmul.mubr.msk.f32.vlgmr.msra.gmra.mxu0 %vm693_vm1, %v4903_v18  ;;  %v4796_v63 = vpop.f32.mrf.mxu1 }
 0x919   : > { %5887 = vmatpush3.msra.mxu0 %v4907_v19  ;;  %5894 = vmatprep.mubr.msk.f32.mxu0 %vm693_vm1, %v6038_v33  ;;  %v4797_v10 = vadd.f32 %v5462_v0, %v4796_v63  ;;  %v5472_v53 = vmul.f32 -1.442695, %v4802_v13 }
 0x91a   : > { %5888 = vmatprep.subr.mxu0 %v4906_v27  ;;  %v5874_v2 = vpop.f32.mrf.mxu1 }
 0x91b   : > { %5889 = vmatpush3.msra.mxu0 %v4906_v27  ;;  %v5471_v14 = vmul.f32 -1.442695, %v4797_v10  ;;  %v4812_v15 = vadd.f32 %v5874_v2, %v5462_v0  ;;  %v5475_v27 = vld [vmem:[%s7025_s9] ss:$0 sm:$0xff] }
 0x91c   : > { %5890 = vmatprep.subr.mxu0 %v4905_v29  ;;  %v4806_v11 = vpop.f32.mrf.mxu1 }
 0x91d   : > { %5891 = vmatpush3.msra.mxu0 %v4905_v29  ;;  %v4807_v48 = vadd.f32 %v5462_v0, %v4806_v11  ;;  %v5474_v37 = vmul.f32 -1.442695, %v4812_v15 }
 0x91e   : > { %5892 = vmatprep.subr.mxu0 %v4904_v32 }
 0x91f   : > { %5893 = vmatpush3.msra.mxu0 %v4904_v32  ;;  %v5473_v52 = vmul.f32 -1.442695, %v4807_v48 }
 0x920   : > { %5895 = vmatmul.mubr.msk.f32.vlgmr.msra.gmra.mxu0 %vm693_vm1, %v6039_v50 }
 0x9d8   : > { %v5885_v49 = vpop.f32.mrf.mxu0 }
 0x9da   : > { %v4984_v7 = vpop.f32.mrf.mxu0 }
 0x9e0   : > { %v5896_v42 = vpop.f32.mrf.mxu0 }
 0x9e1   : > { %v5065_v45 = vadd.f32 %v5896_v42, %v5885_v49 }
 0x9e2   : > { %v5059_v46 = vpop.f32.mrf.mxu0 }
 0x9e3   : > { %v5076_v47 = vadd.f32 %v5480_v43, %v5065_v45  ;;  %v5060_v56 = vadd.f32 %v5059_v46, %v4984_v7 }
 0x9e5   : > { %v5482_v5 = vmul.f32 -1.442695, %v5076_v47  ;;  %v5075_v60 = vadd.f32 %v5480_v43, %v5060_v56  ;;  %v5483_v56 = vld [vmem:[%s7029_s13] ss:$0 sm:$0xff] }
 0x9e7   : > { %6006 = vpow2.f32 %v5482_v5  ;;  %v5481_v59 = vmul.f32 -1.442695, %v5075_v60 }
 0x9e9   : > { %6008 = vpow2.f32 %v5481_v59 }
 0x9f4   : > { %v6007_v3 = vpop.eup %6006 }
 0x9f5   : > { %v5084_v4 = vadd.f32 1.0, %v6007_v3 }
 0x9f6   : > { %v6009_v6 = vpop.eup %6008 }
 0x9f7   : > { %6010 = vrcp.f32 %v5084_v4  ;;  %v5083_v12 = vadd.f32 1.0, %v6009_v6  ;;  %v4889_v6 = vstv %s4888_s29  ;;  %s6059_s29 = sshll.u32 %s6130_s1, 4  ;;  %s6060_s29 = int_to_ptr.vmem [resolvable:$false] %s6059_s29 }
 0x9f8   : > { %p6062_p13 = scmp.lt.s32.totalorder %s6967_s16, %s6060_s29 }
 0x9f9   : > { %6012 = vrcp.f32 %v5083_v12 }
 0x9fa   : > { %6014 = vpow2.f32 %v5469_v9 }
 0x9fb   : > { %6016 = vpow2.f32 %v5470_v54 }
 0x9fc   : > { %6018 = vpow2.f32 %v5471_v14  ;;  %v5107_v14 = vstv %s6947_s24  ;;  %s6061_s24 = scalar_lea.vmem %s6060_s29, 512 }
 0x9fd   : > { %6020 = vpow2.f32 %v5473_v52  ;;  %v5206_v52 = vld [vmem:[%s662_s20] sm:$0xff]  ;;  %p6063_p0 = scmp.lt.s32.totalorder %s6061_s24, %s6055_s0 }
 0x9fe   : > { %6022 = vpow2.f32 %v5472_v53 }
 0x9ff   : > { %6024 = vpow2.f32 %v5474_v37  ;;  %p6064_p1 = por %p6063_p0, %p6062_p13 }
 0xa01   : > { %p6065_p2 = pnand %p6064_p1, %p6058_p12 }
 0xa04   : > { %v6011_v24 = vpop.eup %6010 }
 0xa05   : > { %v5090_v40 = vmul.f32 %v6011_v24, %v5076_v47 }
 0xa06   : > { %v6013_v16 = vpop.eup %6012 }
 0xa07   : > { %5125 = vrot.lane.b32.xlu1 %v5090_v40, %s6125_s26  ;;  %v5089_v17 = vmul.f32 %v6013_v16, %v5075_v60  ;;  %v6015_v28 = vpop.eup %6014  ;;  %v5099_v0 = vmul.f32 %v5483_v56, %v5090_v40 }
 0xa08   : > { %v6017_v35 = vpop.eup %6016  ;;  %v4833_v21 = vadd.f32 1.0, %v6015_v28  ;;  %v5207_v28 = vld [vmem:[%s662_s20 + $0x8] sm:$0xff] }
 0xa09   : > { %5123 = vrot.lane.b32.xlu0 %v5089_v17, %s6125_s26  ;;  %v6019_v22 = vpop.eup %6018  ;;  %v4834_v23 = vadd.f32 1.0, %v6017_v35  ;;  %v5098_v60 = vmul.f32 %v5483_v56, %v5089_v17  ;;  %s6973_s26 = scalar_lea.hbm %s7034_s18, %s5493_s22 }
 0xa0a   : > { %v6021_v25 = vpop.eup %6020  ;;  %6026 = vrcp.f32 %v4833_v21  ;;  %v4835_v19 = vadd.f32 1.0, %v6019_v22 }
 0xa0b   : > { %v6023_v26 = vpop.eup %6022  ;;  %6028 = vrcp.f32 %v4834_v23  ;;  %v4837_v31 = vadd.f32 1.0, %v6021_v25  ;;  %v5100_v62 = vsel %vm693_vm1, %v5098_v60, 0.0 }
 0xa0c   : > { %v4836_v55 = vadd.f32 1.0, %v6023_v26  ;;  %6030 = vrcp.f32 %v4835_v19  ;;  %v6025_v34 = vpop.eup %6024 }
 0xa0d   : > { %6032 = vrcp.f32 %v4837_v31  ;;  %v4838_v36 = vadd.f32 1.0, %v6025_v34  ;;  %v5485_v31 = vld [vmem:[%s7031_s15] ss:$0 sm:$0xff] }
 0xa0e   : > { %6034 = vrcp.f32 %v4836_v55 }
 0xa0f   : > { %6036 = vrcp.f32 %v4838_v36 }
 0xa17   : > { %v6027_v20 = vpop.eup %6026 }
 0xa18   : > { %v6029_v30 = vpop.eup %6028  ;;  %v4851_v39 = vmul.f32 %v6027_v20, %v4787_v1  ;;  %v5103_v1 = vsel %vm693_vm1, %v5099_v0, 0.0 }
 0xa19   : > { %v6031_v61 = vpop.eup %6030  ;;  %v4852_v18 = vmul.f32 %v6029_v30, %v4792_v8 }
 0xa1a   : > { %v6033_v29 = vpop.eup %6032  ;;  %v4853_v33 = vmul.f32 %v6031_v61, %v4797_v10  ;;  %v4864_v32 = vmul.f32 %v5475_v27, %v4851_v39 }
 0xa1b   : > { %v6035_v50 = vpop.eup %6034  ;;  %v4855_v51 = vmul.f32 %v6033_v29, %v4807_v48  ;;  %v4865_v38 = vmul.f32 %v5475_v27, %v4852_v18 }
 0xa1c   : > { %v4854_v44 = vmul.f32 %v6035_v50, %v4802_v13  ;;  %v4870_v49 = vsel %vm693_vm1, %v4864_v32, 0.0  ;;  %v4866_v7 = vmul.f32 %v5475_v27, %v4853_v33  ;;  %v6037_v42 = vpop.eup %6036 }
 0xa1d   : > { %v4873_v43 = vsel %vm693_vm1, %v4865_v38, 0.0  ;;  %v4868_v45 = vmul.f32 %v5475_v27, %v4855_v51  ;;  %v4856_v46 = vmul.f32 %v6037_v42, %v4812_v15 }
 0xa1e   : > { %v4876_v57 = vsel %vm693_vm1, %v4866_v7, 0.0  ;;  %v4867_v47 = vmul.f32 %v5475_v27, %v4854_v44 }
 0xa1f   : > { %v4882_v5 = vsel %vm693_vm1, %v4868_v45, 0.0  ;;  %v4869_v59 = vmul.f32 %v5475_v27, %v4856_v46 }
 0xa20   : > { %v4879_v58 = vsel %vm693_vm1, %v4867_v47, 0.0 }
 0xa21   : > { %v4885_v63 = vsel %vm693_vm1, %v4869_v59, 0.0 }
 0xa28   : > { %4871 = vadd.xlane.f32.xlu0 %v4870_v49 }
 0xa2b   : > { %4874 = vadd.xlane.f32.xlu1 %v4873_v43 }
 0xa2c   : > { %4877 = vadd.xlane.f32.xlu0 %v4876_v57 }
 0xa2f   : > { %4883 = vadd.xlane.f32.xlu1 %v4882_v5 }
 0xa30   : > { %4880 = vadd.xlane.f32.xlu0 %v4879_v58 }
 0xa33   : > { %5101 = vadd.xlane.f32.xlu1 %v5100_v62 }
 0xa34   : > { %4886 = vadd.xlane.f32.xlu0 %v4885_v63 }
 0xa38   : > { %5104 = vadd.xlane.f32.xlu0 %v5103_v1 }
 0xa79   : > { %v5126_v3 = vpop.permute.xlu1 %5125 }
 0xa7b   : > { %v5124_v2 = vpop.permute.xlu0 %5123 }
 0xa7c   : > { %5905 = vmatprep.mubr.msk.f32.mxu1 %vm693_vm1, %v5124_v2 }
 0xa7d   : > { %5906 = vmatmul.mubr.msk.f32.vlgmr.msra.gmra.mxu1 %vm693_vm1, %v5126_v3 }
 0xab1   : > { %v4872_v4 = vpop.xlane.xlu0 %4871 }
 0xab2   : > { %v4890_v9 = vadd.f32 %v4889_v6, %v4872_v4 }
 0xab4   : > { %v4875_v8 = vpop.xlane.xlu1 %4874 }
 0xab5   : > { %v4891_v10 = vadd.f32 %v4889_v6, %v4875_v8  ;;  %v4878_v11 = vpop.xlane.xlu0 %4877 }
 0xab6   : > { %v4892_v12 = vadd.f32 %v4889_v6, %v4878_v11 }
 0xab7   : > { %v4897_v41 = vsel %vm4896_vm13, %v4890_v9, %v4891_v10 }
 0xab8   : > { %v4884_v54 = vpop.xlane.xlu1 %4883  ;;  %v4900_v13 = vsel %vm4899_vm14, %v4897_v41, %v4892_v12 }
 0xab9   : > { %v4881_v48 = vpop.xlane.xlu0 %4880  ;;  %v4894_v53 = vadd.f32 %v4889_v6, %v4884_v54  ;;  %v5208_v40 = vadd.f32 %v5206_v52, %v4900_v13 }
 0xaba   : > { %v4893_v15 = vadd.f32 %v4889_v6, %v4881_v48 }
 0xabc   : > { %v5102_v37 = vpop.xlane.xlu1 %5101  ;;  %v4898_v35 = vsel %vm4896_vm13, %v4893_v15, %v4894_v53 }
 0xabd   : > { %v5108_v24 = vadd.f32 %v5107_v14, %v5102_v37  ;;  %v4887_v16 = vpop.xlane.xlu0 %4886 }
 0xabe   : > { %v4895_v17 = vadd.f32 %v4889_v6, %v4887_v16 }
 0xabf   : > { %v5210_v21 = vmul.f32 %v5208_v40, %v5108_v24 }
 0xac0   : > { %v4901_v22 = vsel %vm4899_vm14, %v4898_v35, %v4895_v17 }
 0xac1   : > { %5213 = vst.msk [vmem:[%s668_s21] sm:$0xff] %vm5212_vm15, %v5210_v21  ;;  %v5209_v23 = vadd.f32 %v5207_v28, %v4901_v22  ;;  %v5105_v25 = vpop.xlane.xlu0 %5104 }
 0xac2   : > { %v5109_v19 = vadd.f32 %v5107_v14, %v5105_v25 }
 0xac4   : > { %v5211_v26 = vmul.f32 %v5209_v23, %v5109_v19 }
 0xac6   : > { %5214 = vst.msk [vmem:[%s668_s21 + $0x8] sm:$0xff] %vm5212_vm15, %v5211_v26  ;;  %s6976_s21 = scalar_lea.sflag [#allocation5], %s637_s5 }
 0xb3d   : > { %v5907_v55 = vpop.f32.mrf.mxu1 }
 0xb3e   : > { %v5203_v34 = vadd.f32 %v5907_v55, %v5485_v31 }
 0xb3f   : > { %v5197_v36 = vpop.f32.mrf.mxu1 }
 0xb40   : > { %5216 = vst.msk [vmem:[%s639_s25 + $0x8] sm:$0xff] %vm693_vm1, %v5203_v34  ;;  %v5198_v20 = vadd.f32 %v5485_v31, %v5197_v36 }
 0xb42   : > { %5215 = vst.msk [vmem:[%s639_s25] sm:$0xff] %vm693_vm1, %v5198_v20 }
 0xb43   : > { %6068 = shalt.err (!%p6065_p2)
}
 0xb44   : > { %s6069_s5 = scalar_lea.hbm %s6973_s26, 256  ;;  %s6073_s20 = scalar_lea.hbm %s7034_s18, 512 }
 0xb45   : > { %p6070_p3 = scmp.ne.s32.totalorder %s6973_s26, %s6069_s5  ;;  %p6074_p8 = scmp.lt.s32.totalorder %s6973_s26, %s7034_s18 }
 0xb46   : > { %p6075_p9 = scmp.lt.s32.totalorder %s6073_s20, %s6069_s5 }
 0xb47   : > { %p6071_p4 = pnand %p6070_p3, %p6266_p5 }
 0xb48   : > { %p6076_p10 = por %p6075_p9, %p6074_p8 }
 0xb49   : > { %p6072_p7 = pneg %p6071_p4 }
 0xb4b   : > { %p6077_p11 = pnand %p6076_p10, %p6072_p7 }
 0xb4d   : > { %6080 = shalt.err (!%p6077_p11)
}
 0xb4e   : > { %s6131_s0 = smov 128   ;;  %s6132_s29 = smov 8  }
 0xb4f   : > { %5912 = dma.vmem_to_hbm [thread:$0]  (%p6266_p5), %s6967_s16, 256, %s6973_s26, %s6976_s21, %s6131_s0, %s6131_s0, %s6132_s29  }
 0xb50 PF: > { %p5924_p12 = scmp.ge.s32.totalorder %s6119_s30, 2  ;;  %s5263_s24 = sand.u32 1, %s6107_s27  }
 0xb51   : > { %s5264_s5 = scalar_lea.sflag [#allocation5], %s5263_s24 }
 0xb52   : > { %p5919_p13 = pnand %p5924_p12, %p6270_p6 }
 0xb54   : > { %p5920_p0 = pneg %p5919_p13 }
 0xb56   : > { %6102 = dma.done.wait (%p5920_p0), %s5264_s5, 256  }
 0xb57   : > { %6104 = vsyncadd (%p5920_p0), %s5264_s5, 4294967040  ;;  %s7057_s30 = sld [smem:[#allocation11_spill]]  ;;  %s7060_s27 = smov %s6111_s28 }
 0xb58   : > { %s7058_s25 = sld [smem:[#allocation10_spill]] }
 0xb59   : > { %s7059_s29 = sld [smem:[#allocation12_spill]] }
 0xb5d   : > { %p30_p1 = scmp.ge.s32.totalorder %s7057_s30, 4  }
 0xb5e   : > { %s7061_s28 = smov %s7058_s25 }
 0xb5f   :  { %32 = sbr.rel (!%p30_p1) target bundleno = 10 (0xa), region = 151 }
 0xb64   :  { %5269 = vsyncpa [#allocation5], 1 }
 0xb65   :  { %5271 = vsyncpa [#allocation5 + $0x1], 1 }
 0xb66   :  { %5272 = vsyncpa [#allocation6], 1 }
 0xb67   :  { %5274 = vsyncpa [#allocation6 + $0x1], 1 }

</bundles_post_ra>
